<compile_context>
chip_gen: v6e
topology: v6e:2x2x1
jax: 0.10.0
libtpu: 0.0.40
codegen_flags: <defaults>
</compile_context>

<pallas_src>
import functools

import jax
import jax.numpy as jnp
from jax.experimental import pallas as pl
from jax.experimental.pallas import tpu as pltpu


def _round_up(x, m):
    return ((x + m - 1) // m) * m


def _tarnet_kernel(out_dim, hy, return_prob, mxu_dtype, fuse_l2, write_fr, *refs):
    if fuse_l2:
        (x_ref, wz_ref, bz_ref, wa_ref, ba_ref, wb_ref, bb_ref) = refs[:7]
        out_refs = refs[7:]
    else:
        (x_ref, wz_ref, bz_ref, wa_ref, ba_ref, w0b_ref, w1b_ref, bb_ref) = refs[:8]
        out_refs = refs[8:]
    y_ref = out_refs[0]

    # Shared representation: fr = relu(x @ Wz + bz); bias add + ReLU in f32.
    x = x_ref[...].astype(mxu_dtype)
    fr = jnp.dot(x, wz_ref[...], preferred_element_type=jnp.float32) + bz_ref[...]
    fr = jnp.maximum(fr, 0.0)
    if write_fr:
        out_refs[1][...] = fr.astype(out_refs[1].dtype)

    # Fused heads, first layer: [h0 | h1] = relu(fr @ [W0a | W1a] + [b0a | b1a]).
    # Output width 2*Hy fills the 256-wide MXU and reads fr from vregs once.
    h = jnp.dot(fr.astype(mxu_dtype), wa_ref[...],
                preferred_element_type=jnp.float32) + ba_ref[...]
    h = jnp.maximum(h, 0.0)
    h = h.astype(mxu_dtype)

    if fuse_l2:
        # Block-diagonal second layer (only used while 2*O <= 128):
        #   [y0 | y1] = [h0 | h1] @ [[W0b, 0], [0, W1b]] + [b0b | b1b]
        y = jnp.dot(h, wb_ref[...], preferred_element_type=jnp.float32) + bb_ref[...]
    else:
        y0 = (jnp.dot(h[:, :hy], w0b_ref[...], preferred_element_type=jnp.float32)
              + bb_ref[:, :out_dim])
        y1 = (jnp.dot(h[:, hy:], w1b_ref[...], preferred_element_type=jnp.float32)
              + bb_ref[:, out_dim:])
        y = jnp.concatenate([y0, y1], axis=-1)

    if return_prob:  # static flag; per-head softmax (matches torch.softmax(dim=1)).
        # NOTE: with out_dim == 1 this is all-ones (same as the PyTorch reference).
        y0s = jax.nn.softmax(y[:, :out_dim], axis=-1)
        y1s = jax.nn.softmax(y[:, out_dim:], axis=-1)
        y = jnp.concatenate([y0s, y1s], axis=-1)

    y_ref[...] = y.astype(y_ref.dtype)


def tarnet_forward(x, params, *, block_n=512, return_prob=False,
                   use_bf16_mxu=False, return_fr=True, out_dtype=None):
    """Fused TarNet forward Pallas kernel.

    x: (N, D) float32; params: dict of weights (in, out) / biases (1, out).
    Returns (y0, y1, fr) like TarNetBase.forward (fr is None when return_fr=False).
    use_bf16_mxu=True -> bf16 MXU operands with f32 accumulation (v6e/v7x fast path).
    out_dtype=jnp.bfloat16 -> store y / fr as bf16, halving the dominant HBM writeback.
    """
    N, D = x.shape
    Hz = params["wz"].shape[1]
    Hy = params["w0a"].shape[1]
    O = params["w0b"].shape[1]
    f32 = jnp.float32
    out_dtype = jnp.dtype(out_dtype if out_dtype is not None else x.dtype)
    mxu_dtype = jnp.bfloat16 if use_bf16_mxu else x.dtype
    w_dtype = jnp.bfloat16 if use_bf16_mxu else params["wz"].dtype

    # Block-diag fusion only while the packed [y0|y1] fits one 128-lane slab;
    # beyond that the zero half just doubles MXU work / weight DMA.
    fuse_l2 = (2 * O) <= 128

    # ---- Fuse the two heads' weights once in the wrapper (layout plumbing) ----
    wz = params["wz"].astype(w_dtype)
    bz = params["bz"].astype(f32)
    wa = jnp.concatenate([params["w0a"], params["w1a"]], axis=1).astype(w_dtype)  # (Hz, 2Hy)
    ba = jnp.concatenate([params["b0a"], params["b1a"]], axis=1).astype(f32)      # (1, 2Hy)
    bb = jnp.concatenate([params["b0b"], params["b1b"]], axis=1).astype(f32)      # (1, 2O)
    if fuse_l2:
        wb = jnp.zeros((2 * Hy, 2 * O), w_dtype)
        wb = (wb.at[:Hy, :O].set(params["w0b"].astype(w_dtype))
                .at[Hy:, O:].set(params["w1b"].astype(w_dtype)))                  # block-diag
        w_l2 = (wb,)
    else:
        w_l2 = (params["w0b"].astype(w_dtype), params["w1b"].astype(w_dtype))

    # ---- Row tile: large (default 512), multiple of 8 (16 for bf16 outputs).
    # No forced multi-tile split: v5e/v6e are single-TC (split = pure overhead);
    # v7x still gets >=2 parallel tiles whenever N > block_n.
    mult = 16 if out_dtype.itemsize < 4 else 8
    bn = max(mult, min(_round_up(block_n, mult), _round_up(N, mult)))
    grid_n = pl.cdiv(N, bn)
    n_pad = grid_n * bn
    x_in = x if n_pad == N else jnp.pad(x, ((0, n_pad - N), (0, 0)))
    # (padded rows compute relu(bz)-derived garbage; they are sliced off below.)

    row_tile = lambda i: (i, 0)
    replicated = lambda i: (0, 0)
    full = lambda shape: pl.BlockSpec(shape, replicated)

    in_specs = [
        pl.BlockSpec((bn, D), row_tile),              # x tile
        full((D, Hz)), full((1, Hz)),                 # Wz, bz
        full((Hz, 2 * Hy)), full((1, 2 * Hy)),        # fused [W0a | W1a], [b0a | b1a]
    ]
    if fuse_l2:
        in_specs += [full((2 * Hy, 2 * O))]           # block-diag [W0b, W1b]
    else:
        in_specs += [full((Hy, O)), full((Hy, O))]    # per-head W0b, W1b
    in_specs += [full((1, 2 * O))]                    # [b0b | b1b]

    out_specs = [pl.BlockSpec((bn, 2 * O), row_tile)]                 # packed [y0 | y1]
    out_shape = [jax.ShapeDtypeStruct((n_pad, 2 * O), out_dtype)]
    if return_fr:
        out_specs.append(pl.BlockSpec((bn, Hz), row_tile))            # fr (lane-dense)
        out_shape.append(jax.ShapeDtypeStruct((n_pad, Hz), out_dtype))

    inputs = (x_in, wz, bz, wa, ba) + w_l2 + (bb,)

    # Advisory cost estimate for XLA scheduling.
    l2_flops = (2 * Hy) * (2 * O) if fuse_l2 else 2 * (Hy * O)
    flops = 2 * n_pad * (D * Hz + Hz * 2 * Hy + l2_flops)
    out_elems_total = n_pad * (2 * O + (Hz if return_fr else 0))
    bytes_accessed = int(sum(a.size * a.dtype.itemsize for a in inputs)
                         + out_elems_total * out_dtype.itemsize)
    cost = pl.CostEstimate(flops=flops,
                           transcendentals=(n_pad * 2 * O if return_prob else 0),
                           bytes_accessed=bytes_accessed)

    # VMEM budget: double-buffered x tile + outputs, 2x weights (default pipelining),
    # plus the f32 intermediates Mosaic materializes (fr before cast, h, y).
    # Capped at 48 MiB so v7x's 64 MiB physical VMEM keeps compiler-scratch headroom.
    w_bytes = sum(a.size * a.dtype.itemsize for a in inputs[1:])
    out_tile_elems = bn * (2 * O + (Hz if return_fr else 0))
    vmem_est = (2 * bn * D * x_in.dtype.itemsize
                + 2 * w_bytes
                + bn * (Hz + 2 * Hy + 2 * O) * 4
                + 2 * out_tile_elems * out_dtype.itemsize)
    vmem_limit = int(min(max(int(1.5 * vmem_est), 8 * 2 ** 20), 48 * 2 ** 20))

    kernel = functools.partial(_tarnet_kernel, O, Hy, return_prob, mxu_dtype,
                               fuse_l2, return_fr)

    outs = pl.pallas_call(
        kernel,
        out_shape=out_shape,
        grid_spec=pltpu.PrefetchScalarGridSpec(
            num_scalar_prefetch=0,
            grid=(grid_n,),
            in_specs=in_specs,
            out_specs=out_specs,
        ),
        compiler_params=pltpu.CompilerParams(
            dimension_semantics=("parallel",),
            vmem_limit_bytes=vmem_limit),
        cost_estimate=cost,
    )(*inputs)

    if return_fr:
        y_packed, fr = outs
        fr = fr[:N]
    else:
        (y_packed,) = outs
        fr = None
    y0 = y_packed[:N, :O]
    y1 = y_packed[:N, O:]
    return y0, y1, fr


def _init_linear(key, fan_in, fan_out, dtype=jnp.float32):
    """PyTorch nn.Linear-style init: U(-1/sqrt(fan_in), 1/sqrt(fan_in))."""
    kw, kb = jax.random.split(key)
    bound = 1.0 / jnp.sqrt(jnp.asarray(fan_in, dtype))
    w = jax.random.uniform(kw, (fan_in, fan_out), dtype, -bound, bound)
    b = jax.random.uniform(kb, (1, fan_out), dtype, -bound, bound)
    return w, b


def make_params(key, d_in, hz, hy, out_dim):
    ks = jax.random.split(key, 5)
    wz, bz = _init_linear(ks[0], d_in, hz)
    w0a, b0a = _init_linear(ks[1], hz, hy)
    w0b, b0b = _init_linear(ks[2], hy, out_dim)
    w1a, b1a = _init_linear(ks[3], hz, hy)
    w1b, b1b = _init_linear(ks[4], hy, out_dim)
    return dict(wz=wz, bz=bz,
                w0a=w0a, b0a=b0a, w0b=w0b, b0b=b0b,
                w1a=w1a, b1a=b1a, w1b=w1b, b1b=b1b)


def _reference_forward(x, p, return_prob=False):
    fr = jnp.maximum(x @ p["wz"] + p["bz"], 0.0)
    h0 = jnp.maximum(fr @ p["w0a"] + p["b0a"], 0.0)
    y0 = h0 @ p["w0b"] + p["b0b"]
    h1 = jnp.maximum(fr @ p["w1a"] + p["b1a"], 0.0)
    y1 = h1 @ p["w1b"] + p["b1b"]
    if return_prob:
        y0 = jax.nn.softmax(y0, axis=-1)
        y1 = jax.nn.softmax(y1, axis=-1)
    return y0, y1, fr


if __name__ == "__main__":
    # Small shapes consistent with the module (LazyLinear => input dim is free):
    # batch=200 (not a tile multiple), input_dim=32, sizes_z=[256], sizes_y=[128, 1].
    N, D, Hz, Hy, O = 200, 32, 256, 128, 1

    key = jax.random.PRNGKey(0)
    kx, kp = jax.random.split(key)
    x = jax.random.normal(kx, (N, D), jnp.float32)
    params = make_params(kp, D, Hz, Hy, O)
    r0, r1, rfr = _reference_forward(x, params)

    # 1) f32 path, default tile (single tile, N <= block_n): exact PyTorch-f32 semantics.
    y0, y1, fr = tarnet_forward(x, params, return_prob=False)
    jax.block_until_ready((y0, y1, fr))
    assert y0.shape == (N, O) and y1.shape == (N, O) and fr.shape == (N, Hz)
    assert jnp.allclose(y0, r0, atol=1e-4, rtol=1e-4)
    assert jnp.allclose(y1, r1, atol=1e-4, rtol=1e-4)
    assert jnp.allclose(fr, rfr, atol=1e-4, rtol=1e-4)

    # 2) f32 path, small tile -> 2 grid steps + zero padding (exercises the grid path).
    g0, g1, gfr = tarnet_forward(x, params, block_n=128, return_prob=False)
    jax.block_until_ready((g0, g1, gfr))
    assert jnp.allclose(g0, r0, atol=1e-4, rtol=1e-4)
    assert jnp.allclose(g1, r1, atol=1e-4, rtol=1e-4)
    assert jnp.allclose(gfr, rfr, atol=1e-4, rtol=1e-4)

    # 3) bf16 MXU + bf16 outputs + skip fr writeback (bandwidth fast path, v6e/v7x).
    b0, b1, bfr = tarnet_forward(x, params, return_prob=False,
                                 use_bf16_mxu=True, return_fr=False,
                                 out_dtype=jnp.bfloat16)
    jax.block_until_ready((b0, b1))
    assert bfr is None
    assert jnp.allclose(b0.astype(jnp.float32), r0, atol=5e-2, rtol=5e-2)
    assert jnp.allclose(b1.astype(jnp.float32), r1, atol=5e-2, rtol=5e-2)

    # TODO(synk): dropout / BatchNorm1d branches of _build_model are disabled in the
    # default config (dropout=None, bn=False) and are not implemented in the kernel.
    print("KERNEL_OK")
</pallas_src>

<mosaic_0001>
module attributes {stable_mosaic.version = 11 : i64} {
  func.func @_tarnet_kernel(%arg0: i32, %arg1: memref<200x32xf32, #tpu.memory_space<vmem>>, %arg2: memref<32x256xf32, #tpu.memory_space<vmem>>, %arg3: memref<1x256xf32, #tpu.memory_space<vmem>>, %arg4: memref<256x256xf32, #tpu.memory_space<vmem>>, %arg5: memref<1x256xf32, #tpu.memory_space<vmem>>, %arg6: memref<256x2xf32, #tpu.memory_space<vmem>>, %arg7: memref<1x2xf32, #tpu.memory_space<vmem>>, %arg8: memref<200x2xf32, #tpu.memory_space<vmem>>, %arg9: memref<200x256xf32, #tpu.memory_space<vmem>>) attributes {dimension_semantics = [#tpu.dimension_semantics<parallel>], iteration_bounds = array<i64: 1>, scalar_prefetch = 0 : i64, scratch_operands = 0 : i64, tpu.core_type = #tpu.core_type<tc>, window_params = [{transform_indices = @transform_0, window_bounds = array<i64: 200, 32>}, {pipeline_mode = #tpu.pipeline_mode<synchronous>, transform_indices = @transform_1, window_bounds = array<i64: 32, 256>}, {pipeline_mode = #tpu.pipeline_mode<synchronous>, transform_indices = @transform_2, window_bounds = array<i64: 1, 256>}, {pipeline_mode = #tpu.pipeline_mode<synchronous>, transform_indices = @transform_3, window_bounds = array<i64: 256, 256>}, {pipeline_mode = #tpu.pipeline_mode<synchronous>, transform_indices = @transform_4, window_bounds = array<i64: 1, 256>}, {pipeline_mode = #tpu.pipeline_mode<synchronous>, transform_indices = @transform_5, window_bounds = array<i64: 256, 2>}, {pipeline_mode = #tpu.pipeline_mode<synchronous>, transform_indices = @transform_6, window_bounds = array<i64: 1, 2>}, {transform_indices = @transform_7, window_bounds = array<i64: 200, 2>}, {transform_indices = @transform_8, window_bounds = array<i64: 200, 256>}]} {
    %c0 = arith.constant 0 : index
    %c0_0 = arith.constant 0 : index
    %0 = vector.load %arg1[%c0, %c0_0] : memref<200x32xf32, #tpu.memory_space<vmem>>, vector<200x32xf32>
    %c0_1 = arith.constant 0 : index
    %c0_2 = arith.constant 0 : index
    %1 = vector.load %arg2[%c0_1, %c0_2] : memref<32x256xf32, #tpu.memory_space<vmem>>, vector<32x256xf32>
    %cst = arith.constant dense<0.000000e+00> : vector<200x256xf32>
    %2 = tpu.matmul %0, %1, %cst {dimension_numbers = #tpu.dot_dimension_numbers<[1], [0], [0], [1], [0, 0, 1, 1], [], []>} : vector<200x32xf32>, vector<32x256xf32>, vector<200x256xf32> -> vector<200x256xf32>
    %c0_3 = arith.constant 0 : index
    %c0_4 = arith.constant 0 : index
    %3 = vector.load %arg3[%c0_3, %c0_4] : memref<1x256xf32, #tpu.memory_space<vmem>>, vector<1x256xf32>
    %4 = vector.broadcast %3 : vector<1x256xf32> to vector<200x256xf32>
    %5 = arith.addf %2, %4 : vector<200x256xf32>
    %cst_5 = arith.constant 0.000000e+00 : f32
    %6 = vector.broadcast %cst_5 : f32 to vector<200x256xf32>
    %7 = arith.maximumf %5, %6 : vector<200x256xf32>
    %c0_6 = arith.constant 0 : index
    %c0_7 = arith.constant 0 : index
    %8 = vector.load %arg9[%c0_6, %c0_7] : memref<200x256xf32, #tpu.memory_space<vmem>>, vector<200x256xf32>
    tpu.vector_store %arg9[%c0_6, %c0_7], %7 {strides = array<i32>} : memref<200x256xf32, #tpu.memory_space<vmem>>, vector<200x256xf32>,
    %c0_8 = arith.constant 0 : index
    %c0_9 = arith.constant 0 : index
    %9 = vector.load %arg4[%c0_8, %c0_9] : memref<256x256xf32, #tpu.memory_space<vmem>>, vector<256x256xf32>
    %cst_10 = arith.constant dense<0.000000e+00> : vector<200x256xf32>
    %10 = tpu.matmul %7, %9, %cst_10 {dimension_numbers = #tpu.dot_dimension_numbers<[1], [0], [0], [1], [0, 0, 1, 1], [], []>} : vector<200x256xf32>, vector<256x256xf32>, vector<200x256xf32> -> vector<200x256xf32>
    %c0_11 = arith.constant 0 : index
    %c0_12 = arith.constant 0 : index
    %11 = vector.load %arg5[%c0_11, %c0_12] : memref<1x256xf32, #tpu.memory_space<vmem>>, vector<1x256xf32>
    %12 = vector.broadcast %11 : vector<1x256xf32> to vector<200x256xf32>
    %13 = arith.addf %10, %12 : vector<200x256xf32>
    %cst_13 = arith.constant 0.000000e+00 : f32
    %14 = vector.broadcast %cst_13 : f32 to vector<200x256xf32>
    %15 = arith.maximumf %13, %14 : vector<200x256xf32>
    %c0_14 = arith.constant 0 : index
    %c0_15 = arith.constant 0 : index
    %16 = vector.load %arg6[%c0_14, %c0_15] : memref<256x2xf32, #tpu.memory_space<vmem>>, vector<256x2xf32>
    %cst_16 = arith.constant dense<0.000000e+00> : vector<200x2xf32>
    %17 = tpu.matmul %15, %16, %cst_16 {dimension_numbers = #tpu.dot_dimension_numbers<[1], [0], [0], [1], [0, 0, 1, 1], [], []>} : vector<200x256xf32>, vector<256x2xf32>, vector<200x2xf32> -> vector<200x2xf32>
    %c0_17 = arith.constant 0 : index
    %c0_18 = arith.constant 0 : index
    %18 = vector.load %arg7[%c0_17, %c0_18] : memref<1x2xf32, #tpu.memory_space<vmem>>, vector<1x2xf32>
    %19 = vector.broadcast %18 : vector<1x2xf32> to vector<200x2xf32>
    %20 = arith.addf %17, %19 : vector<200x2xf32>
    %c0_19 = arith.constant 0 : index
    %c0_20 = arith.constant 0 : index
    %21 = vector.load %arg8[%c0_19, %c0_20] : memref<200x2xf32, #tpu.memory_space<vmem>>, vector<200x2xf32>
    tpu.vector_store %arg8[%c0_19, %c0_20], %20 {strides = array<i32>} : memref<200x2xf32, #tpu.memory_space<vmem>>, vector<200x2xf32>,
    return
  }
  func.func @transform_0(%arg0: i32) -> (i32, i32) {
    %c0_i32 = arith.constant 0 : i32
    %c0_i32_0 = arith.constant 0 : i32
    return %arg0, %c0_i32 : i32, i32
  }
  func.func @transform_1(%arg0: i32) -> (i32, i32) {
    %c0_i32 = arith.constant 0 : i32
    %c0_i32_0 = arith.constant 0 : i32
    %c0_i32_1 = arith.constant 0 : i32
    return %c0_i32, %c0_i32_0 : i32, i32
  }
  func.func @transform_2(%arg0: i32) -> (i32, i32) {
    %c0_i32 = arith.constant 0 : i32
    %c0_i32_0 = arith.constant 0 : i32
    %c0_i32_1 = arith.constant 0 : i32
    return %c0_i32, %c0_i32_0 : i32, i32
  }
  func.func @transform_3(%arg0: i32) -> (i32, i32) {
    %c0_i32 = arith.constant 0 : i32
    %c0_i32_0 = arith.constant 0 : i32
    %c0_i32_1 = arith.constant 0 : i32
    return %c0_i32, %c0_i32_0 : i32, i32
  }
  func.func @transform_4(%arg0: i32) -> (i32, i32) {
    %c0_i32 = arith.constant 0 : i32
    %c0_i32_0 = arith.constant 0 : i32
    %c0_i32_1 = arith.constant 0 : i32
    return %c0_i32, %c0_i32_0 : i32, i32
  }
  func.func @transform_5(%arg0: i32) -> (i32, i32) {
    %c0_i32 = arith.constant 0 : i32
    %c0_i32_0 = arith.constant 0 : i32
    %c0_i32_1 = arith.constant 0 : i32
    return %c0_i32, %c0_i32_0 : i32, i32
  }
  func.func @transform_6(%arg0: i32) -> (i32, i32) {
    %c0_i32 = arith.constant 0 : i32
    %c0_i32_0 = arith.constant 0 : i32
    %c0_i32_1 = arith.constant 0 : i32
    return %c0_i32, %c0_i32_0 : i32, i32
  }
  func.func @transform_7(%arg0: i32) -> (i32, i32) {
    %c0_i32 = arith.constant 0 : i32
    %c0_i32_0 = arith.constant 0 : i32
    return %arg0, %c0_i32 : i32, i32
  }
  func.func @transform_8(%arg0: i32) -> (i32, i32) {
    %c0_i32 = arith.constant 0 : i32
    %c0_i32_0 = arith.constant 0 : i32
    return %arg0, %c0_i32 : i32, i32
  }
}

</mosaic_0001>

<bundles_post_ra>
// kernel: tpu_custom_call.1
= control target key start
LH: loop header
LB: loop body
LE: loop exit
PB: predicated region body
PF: predicated region fallthrough
CT: control target
= control target key end

     0   :  { %14 = vsyncpa [#allocation3], 0  ;;  %s2068_s0 = inlined_call_operand.vmem [shape: f32[200,32], index: 0, kind: input, shape index: {}]   ;;  %s2069_s1 = inlined_call_operand.hbm [shape: f32[32,256], index: 1, kind: input, shape index: {}]   ;;  %s2070_s2 = inlined_call_operand.vmem [shape: f32[1,256], index: 2, kind: input, shape index: {}]   ;;  %s2071_s3 = inlined_call_operand.vmem [shape: f32[256,256], index: 3, kind: input, shape index: {}]   ;;  %s2072_s4 = inlined_call_operand.vmem [shape: f32[1,256], index: 4, kind: input, shape index: {}]   ;;  %s2073_s5 = inlined_call_operand.vmem [shape: f32[256,2], index: 5, kind: input, shape index: {}]   ;;  %s2074_s6 = inlined_call_operand.vmem [shape: f32[1,2], index: 6, kind: input, shape index: {}]   ;;  %s2075_s7 = inlined_call_operand.vmem [shape: f32[200,2], index: 7, kind: output, shape index: {0}]   ;;  %s2076_s8 = inlined_call_operand.hbm [shape: f32[200,256], index: 8, kind: output, shape index: {1}]  }
   0x1   :  { %15 = vsyncpa [#allocation4], 0  ;;  %s1179_s27 = smov [#allocation2]  }
   0x2   :  { %s23_s28 = sshll.u32 %s1179_s27, 4  ;;  %s24_s28 = int_to_ptr.vmem [resolvable:$true] %s23_s28 }
   0x3   :  { %s1143_s29 = scalar_lea.vmem %s24_s28, 1024  ;;  %p1148_p1 = scmp.lt.s32.totalorder %s24_s28, %s24_s28 }
   0x4   :  { %p1144_p0 = scmp.ne.s32.totalorder %s24_s28, %s1143_s29  ;;  %p1149_p2 = scmp.lt.s32.totalorder %s1143_s29, %s1143_s29 }
   0x6   :  { %p1150_p3 = por %p1149_p2, %p1148_p1 }
   0x8   :  { %p1151_p4 = pnand %p1150_p3, %p1144_p0 }
   0xa   :  { %1154 = shalt.err (!%p1151_p4)
}
   0xb   :  { %s1180_s30 = smov 256   ;;  %s1181_s9 = smov 16  }
   0xc   :  { %29 = dma.hbm_to_vmem [thread:$0]  %s2069_s1, 1024, %s24_s28, [#allocation3], %s1180_s30, %s1180_s30, %s1181_s9  }
   0xd   :  { %1175 = dma.done.wait [#allocation3], 1024  }
   0xe   :  { %1176 = vsyncadd [#allocation3], 4294966272  ;;  %v1182_v0 = vmov 0.0   ;;  %v75_v1 = vld [vmem:[#allocation2 + $0x38] sm:$0xff]  ;;  %v74_v2 = vld [vmem:[#allocation2 + $0x30] sm:$0xff]  ;;  %vm88_vm0 = vcmask 261120  }
   0xf   :  { %228 = vmatprep.mubr.f32.mxu0 %v1182_v0  ;;  %324 = vmatprep.mubr.f32.mxu1 %v1182_v0  ;;  %v73_v3 = vld [vmem:[#allocation2 + $0x28] sm:$0xff]  ;;  %v72_v4 = vld [vmem:[#allocation2 + $0x20] sm:$0xff]  ;;  %v71_v5 = vld [vmem:[#allocation2 + $0x18] sm:$0xff] }
  0x10   :  { %188 = vmatprep.subr.mxu0 %v75_v1  ;;  %1122 = vmatprep.subr.mxu1 %v75_v1  ;;  %v70_v6 = vld [vmem:[#allocation2 + $0x10] sm:$0xff]  ;;  %v69_v7 = vld [vmem:[#allocation2 + $0x8] sm:$0xff]  ;;  %v68_v8 = vld [vmem:[#allocation2] sm:$0xff] }
  0x11   :  { %189 = vmatpush1.msra.mxu0 %v74_v2  ;;  %1126 = vmatpush1.msra.mxu1 %v74_v2  ;;  %v43_v9 = vld [vmem:[%s2068_s0] sm:$0xff]  ;;  %v44_v11 = vld [vmem:[%s2068_s0 + $0x8] sm:$0xff]  ;;  %v510_v13 = vld [vmem:[%s2071_s3 + $0xf8] sm:$0xff] }
  0x12   :  { %190 = vmatprep.subr.mxu0 %v73_v3  ;;  %1123 = vmatprep.subr.mxu1 %v73_v3  ;;  %v59_v10 = vld [vmem:[%s2068_s0 + $0x80] sm:$0xff]  ;;  %v60_v12 = vld [vmem:[%s2068_s0 + $0x88] sm:$0xff]  ;;  %v509_v14 = vld [vmem:[%s2071_s3 + $0xf0] sm:$0xff] }
  0x13   :  { %191 = vmatpush1.msra.mxu0 %v72_v4  ;;  %1127 = vmatpush1.msra.mxu1 %v72_v4  ;;  %v508_v15 = vld [vmem:[%s2071_s3 + $0xe8] sm:$0xff]  ;;  %v45_v16 = vld [vmem:[%s2068_s0 + $0x10] sm:$0xff]  ;;  %v507_v18 = vld [vmem:[%s2071_s3 + $0xe0] sm:$0xff] }
  0x14   :  { %192 = vmatprep.subr.mxu0 %v71_v5  ;;  %1124 = vmatprep.subr.mxu1 %v71_v5  ;;  %v61_v17 = vld [vmem:[%s2068_s0 + $0x90] sm:$0xff]  ;;  %v506_v19 = vld [vmem:[%s2071_s3 + $0xd8] sm:$0xff]  ;;  %v504_v23 = vld [vmem:[%s2071_s3 + $0xc8] sm:$0xff] }
  0x15   :  { %193 = vmatpush1.msra.mxu0 %v70_v6  ;;  %1128 = vmatpush1.msra.mxu1 %v70_v6  ;;  %v46_v20 = vld [vmem:[%s2068_s0 + $0x18] sm:$0xff]  ;;  %v505_v22 = vld [vmem:[%s2071_s3 + $0xd0] sm:$0xff]  ;;  %v47_v24 = vld [vmem:[%s2068_s0 + $0x20] sm:$0xff] }
  0x16   :  { %194 = vmatprep.subr.mxu0 %v69_v7  ;;  %1125 = vmatprep.subr.mxu1 %v69_v7  ;;  %v62_v21 = vld [vmem:[%s2068_s0 + $0x98] sm:$0xff]  ;;  %v63_v25 = vld [vmem:[%s2068_s0 + $0xa0] sm:$0xff]  ;;  %v48_v28 = vld [vmem:[%s2068_s0 + $0x28] sm:$0xff] }
  0x17   :  { %195 = vmatpush1.msra.mxu0 %v68_v8  ;;  %1129 = vmatpush1.msra.mxu1 %v68_v8  ;;  %v503_v26 = vld [vmem:[%s2071_s3 + $0xc0] sm:$0xff]  ;;  %v502_v27 = vld [vmem:[%s2071_s3 + $0xb8] sm:$0xff]  ;;  %v64_v29 = vld [vmem:[%s2068_s0 + $0xa8] sm:$0xff] }
  0x18   :  { %1096 = vmatmul.mubr.msk.f32.vlgmr.msra.gmra.mxu0 %vm88_vm0, %v43_v9  ;;  %1112 = vmatmul.mubr.msk.f32.vlgmr.msra.gmra.mxu1 %vm88_vm0, %v59_v10  ;;  %v501_v30 = vld [vmem:[%s2071_s3 + $0xb0] sm:$0xff]  ;;  %v500_v31 = vld [vmem:[%s2071_s3 + $0xa8] sm:$0xff]  ;;  %v499_v34 = vld [vmem:[%s2071_s3 + $0xa0] sm:$0xff] }
  0x19   :  { %234 = vmatprep.mubr.f32.mxu0 %v1182_v0  ;;  %330 = vmatprep.mubr.f32.mxu1 %v1182_v0  ;;  %v49_v32 = vld [vmem:[%s2068_s0 + $0x30] sm:$0xff]  ;;  %v498_v35 = vld [vmem:[%s2071_s3 + $0x98] sm:$0xff]  ;;  %v496_v39 = vld [vmem:[%s2071_s3 + $0x88] sm:$0xff] }
  0x1a   :  { %859 = vmatprep.subr.mxu0 %v1182_v0  ;;  %555 = vmatprep.subr.mxu1 %v510_v13  ;;  %v65_v33 = vld [vmem:[%s2068_s0 + $0xb0] sm:$0xff]  ;;  %v50_v36 = vld [vmem:[%s2068_s0 + $0x38] sm:$0xff]  ;;  %v51_v40 = vld [vmem:[%s2068_s0 + $0x40] sm:$0xff] }
  0x1b   :  { %556 = vmatpush1.msra.mxu1 %v509_v14  ;;  %v66_v37 = vld [vmem:[%s2068_s0 + $0xb8] sm:$0xff]  ;;  %v497_v38 = vld [vmem:[%s2071_s3 + $0x90] sm:$0xff]  ;;  %v67_v41 = vld [vmem:[%s2068_s0 + $0xc0] sm:$0xff] }
  0x1c   :  { %1097 = vmatmul.mubr.msk.f32.gmra.mxu0 %vm88_vm0, %v44_v11  ;;  %1113 = vmatmul.mubr.msk.f32.gmra.mxu1 %vm88_vm0, %v60_v12  ;;  %v495_v42 = vld [vmem:[%s2071_s3 + $0x80] sm:$0xff]  ;;  %v494_v43 = vld [vmem:[%s2071_s3 + $0x78] sm:$0xff]  ;;  %v493_v44 = vld [vmem:[%s2071_s3 + $0x70] sm:$0xff] }
  0x1d   :  { %240 = vmatprep.mubr.f32.mxu0 %v1182_v0  ;;  %336 = vmatprep.mubr.f32.mxu1 %v1182_v0  ;;  %v52_v45 = vld [vmem:[%s2068_s0 + $0x48] sm:$0xff]  ;;  %v491_v47 = vld [vmem:[%s2071_s3 + $0x60] sm:$0xff]  ;;  %v490_v48 = vld [vmem:[%s2071_s3 + $0x58] sm:$0xff] }
  0x1e   :  { %557 = vmatprep.subr.mxu1 %v508_v15  ;;  %v492_v46 = vld [vmem:[%s2071_s3 + $0x68] sm:$0xff]  ;;  %v489_v49 = vld [vmem:[%s2071_s3 + $0x50] sm:$0xff]  ;;  %v487_v52 = vld [vmem:[%s2071_s3 + $0x40] sm:$0xff] }
  0x1f   :  { %558 = vmatpush1.msra.mxu1 %v507_v18  ;;  %v53_v50 = vld [vmem:[%s2068_s0 + $0x50] sm:$0xff]  ;;  %v488_v51 = vld [vmem:[%s2071_s3 + $0x48] sm:$0xff]  ;;  %v486_v53 = vld [vmem:[%s2071_s3 + $0x38] sm:$0xff] }
  0x20   :  { %1098 = vmatmul.mubr.msk.f32.gmra.mxu0 %vm88_vm0, %v45_v16  ;;  %1114 = vmatmul.mubr.msk.f32.gmra.mxu1 %vm88_vm0, %v61_v17  ;;  %v485_v54 = vld [vmem:[%s2071_s3 + $0x30] sm:$0xff]  ;;  %v54_v55 = vld [vmem:[%s2068_s0 + $0x58] sm:$0xff]  ;;  %v484_v56 = vld [vmem:[%s2071_s3 + $0x28] sm:$0xff] }
  0x21   :  { %246 = vmatprep.mubr.f32.mxu0 %v1182_v0  ;;  %342 = vmatprep.mubr.f32.mxu1 %v1182_v0  ;;  %v483_v57 = vld [vmem:[%s2071_s3 + $0x20] sm:$0xff]  ;;  %v482_v58 = vld [vmem:[%s2071_s3 + $0x18] sm:$0xff]  ;;  %v481_v59 = vld [vmem:[%s2071_s3 + $0x10] sm:$0xff] }
  0x22   :  { %559 = vmatprep.subr.mxu1 %v506_v19  ;;  %v55_v60 = vld [vmem:[%s2068_s0 + $0x60] sm:$0xff]  ;;  %v480_v61 = vld [vmem:[%s2071_s3 + $0x8] sm:$0xff]  ;;  %v542_v63 = vld [vmem:[%s2071_s3 + $0x1f8] sm:$0xff] }
  0x23   :  { %560 = vmatpush1.msra.mxu1 %v505_v22  ;;  %v479_v62 = vld [vmem:[%s2071_s3] sm:$0xff]  ;;  %v541_v1 = vld [vmem:[%s2071_s3 + $0x1f0] sm:$0xff]  ;;  %v56_v2 = vld [vmem:[%s2068_s0 + $0x68] sm:$0xff] }
  0x24   :  { %1099 = vmatmul.mubr.msk.f32.gmra.mxu0 %vm88_vm0, %v46_v20  ;;  %1115 = vmatmul.mubr.msk.f32.gmra.mxu1 %vm88_vm0, %v62_v21  ;;  %v540_v3 = vld [vmem:[%s2071_s3 + $0x1e8] sm:$0xff]  ;;  %v539_v4 = vld [vmem:[%s2071_s3 + $0x1e0] sm:$0xff]  ;;  %v538_v5 = vld [vmem:[%s2071_s3 + $0x1d8] sm:$0xff] }
  0x25   :  { %252 = vmatprep.mubr.f32.mxu0 %v1182_v0  ;;  %348 = vmatprep.mubr.f32.mxu1 %v1182_v0  ;;  %v537_v6 = vld [vmem:[%s2071_s3 + $0x1d0] sm:$0xff]  ;;  %v536_v8 = vld [vmem:[%s2071_s3 + $0x1c8] sm:$0xff]  ;;  %v535_v9 = vld [vmem:[%s2071_s3 + $0x1c0] sm:$0xff] }
  0x26   :  { %561 = vmatprep.subr.mxu1 %v504_v23  ;;  %v57_v7 = vld [vmem:[%s2068_s0 + $0x70] sm:$0xff]  ;;  %v534_v10 = vld [vmem:[%s2071_s3 + $0x1b8] sm:$0xff]  ;;  %v532_v13 = vld [vmem:[%s2071_s3 + $0x1a8] sm:$0xff] }
  0x27   :  { %562 = vmatpush1.msra.mxu1 %v503_v26  ;;  %v533_v11 = vld [vmem:[%s2071_s3 + $0x1b0] sm:$0xff]  ;;  %v58_v12 = vld [vmem:[%s2068_s0 + $0x78] sm:$0xff]  ;;  %v531_v14 = vld [vmem:[%s2071_s3 + $0x1a0] sm:$0xff] }
  0x28   :  { %1100 = vmatmul.mubr.msk.f32.gmra.mxu0 %vm88_vm0, %v47_v24  ;;  %1116 = vmatmul.mubr.msk.f32.gmra.mxu1 %vm88_vm0, %v63_v25  ;;  %v530_v15 = vld [vmem:[%s2071_s3 + $0x198] sm:$0xff]  ;;  %v529_v16 = vld [vmem:[%s2071_s3 + $0x190] sm:$0xff]  ;;  %v528_v17 = vld [vmem:[%s2071_s3 + $0x188] sm:$0xff] }
  0x29   :  { %258 = vmatprep.mubr.f32.mxu0 %v1182_v0  ;;  %354 = vmatprep.mubr.f32.mxu1 %v1182_v0  ;;  %v527_v18 = vld [vmem:[%s2071_s3 + $0x180] sm:$0xff]  ;;  %v526_v19 = vld [vmem:[%s2071_s3 + $0x178] sm:$0xff]  ;;  %v525_v20 = vld [vmem:[%s2071_s3 + $0x170] sm:$0xff] }
  0x2a   :  { %563 = vmatprep.subr.mxu1 %v502_v27  ;;  %v524_v21 = vld [vmem:[%s2071_s3 + $0x168] sm:$0xff]  ;;  %v523_v22 = vld [vmem:[%s2071_s3 + $0x160] sm:$0xff]  ;;  %v522_v23 = vld [vmem:[%s2071_s3 + $0x158] sm:$0xff] }
  0x2b   :  { %564 = vmatpush1.msra.mxu1 %v501_v30  ;;  %v521_v24 = vld [vmem:[%s2071_s3 + $0x150] sm:$0xff]  ;;  %v520_v25 = vld [vmem:[%s2071_s3 + $0x148] sm:$0xff]  ;;  %v519_v26 = vld [vmem:[%s2071_s3 + $0x140] sm:$0xff] }
  0x2c   :  { %1101 = vmatmul.mubr.msk.f32.gmra.mxu0 %vm88_vm0, %v48_v28  ;;  %1117 = vmatmul.mubr.msk.f32.gmra.mxu1 %vm88_vm0, %v64_v29  ;;  %v518_v27 = vld [vmem:[%s2071_s3 + $0x138] sm:$0xff]  ;;  %v517_v28 = vld [vmem:[%s2071_s3 + $0x130] sm:$0xff]  ;;  %v516_v29 = vld [vmem:[%s2071_s3 + $0x128] sm:$0xff] }
  0x2d   :  { %264 = vmatprep.mubr.f32.mxu0 %v1182_v0  ;;  %360 = vmatprep.mubr.f32.mxu1 %v1182_v0  ;;  %v515_v30 = vld [vmem:[%s2071_s3 + $0x120] sm:$0xff] }
  0x2e   :  { %565 = vmatprep.subr.mxu1 %v500_v31  ;;  %v514_v31 = vld [vmem:[%s2071_s3 + $0x118] sm:$0xff] }
  0x2f   :  { %566 = vmatpush1.msra.mxu1 %v499_v34  ;;  %v511_v34 = vld [vmem:[%s2071_s3 + $0x100] sm:$0xff] }
  0x30   :  { %1102 = vmatmul.mubr.msk.f32.gmra.mxu0 %vm88_vm0, %v49_v32  ;;  %1118 = vmatmul.mubr.msk.f32.gmra.mxu1 %vm88_vm0, %v65_v33  ;;  %v513_v32 = vld [vmem:[%s2071_s3 + $0x110] sm:$0xff]  ;;  %v512_v33 = vld [vmem:[%s2071_s3 + $0x108] sm:$0xff] }
  0x31   :  { %270 = vmatprep.mubr.f32.mxu0 %v1182_v0  ;;  %366 = vmatprep.mubr.f32.mxu1 %v1182_v0 }
  0x32   :  { %567 = vmatprep.subr.mxu1 %v498_v35  ;;  %v835_v35 = vld [vmem:[%s2073_s5 + $0x78] sm:$0xff] }
  0x33   :  { %568 = vmatpush1.msra.mxu1 %v497_v38  ;;  %860 = vmatpush1.msra.mxu0 %v835_v35  ;;  %v832_v38 = vld [vmem:[%s2073_s5 + $0x60] sm:$0xff] }
  0x34   :  { %1103 = vmatmul.mubr.msk.f32.gmra.mxu0 %vm88_vm0, %v50_v36  ;;  %1119 = vmatmul.mubr.msk.f32.gmra.mxu1 %vm88_vm0, %v66_v37  ;;  %v834_v36 = vld [vmem:[%s2073_s5 + $0x70] sm:$0xff]  ;;  %v833_v37 = vld [vmem:[%s2073_s5 + $0x68] sm:$0xff] }
  0x35   :  { %276 = vmatprep.mubr.f32.mxu0 %v1182_v0  ;;  %372 = vmatprep.mubr.f32.mxu1 %v1182_v0 }
  0x36   :  { %569 = vmatprep.subr.mxu1 %v496_v39  ;;  %861 = vmatprep.subr.mxu0 %v1182_v0  ;;  %v831_v39 = vld [vmem:[%s2073_s5 + $0x58] sm:$0xff] }
  0x37   :  { %570 = vmatpush1.msra.mxu1 %v495_v42  ;;  %862 = vmatpush1.msra.mxu0 %v834_v36  ;;  %v829_v42 = vld [vmem:[%s2073_s5 + $0x48] sm:$0xff] }
  0x38   :  { %1104 = vmatmul.mubr.msk.f32.gmra.mxu0 %vm88_vm0, %v51_v40  ;;  %1120 = vmatmul.mubr.msk.f32.gmra.mxu1 %vm88_vm0, %v67_v41  ;;  %v830_v40 = vld [vmem:[%s2073_s5 + $0x50] sm:$0xff]  ;;  %v78_v41 = vlaneseq }
  0x39   :  { %282 = vmatprep.mubr.f32.mxu0 %v1182_v0  ;;  %571 = vmatprep.subr.mxu1 %v494_v43  ;;  %v828_v43 = vld [vmem:[%s2073_s5 + $0x40] sm:$0xff] }
  0x3a   :  { %572 = vmatpush1.msra.mxu1 %v493_v44  ;;  %863 = vmatprep.subr.mxu0 %v1182_v0  ;;  %v1583_v44 = vshrl.u32 %v78_v41, 7  ;;  %v847_v41 = vld [vmem:[%s2073_s5 + $0xd8] sm:$0xff] }
  0x3b   :  { %573 = vmatprep.subr.mxu1 %v492_v46  ;;  %864 = vmatpush1.msra.mxu0 %v833_v37  ;;  %v826_v46 = vld [vmem:[%s2073_s5 + $0x30] sm:$0xff] }
  0x3c   :  { %1105 = vmatmul.mubr.msk.f32.gmra.mxu0 %vm88_vm0, %v52_v45  ;;  %574 = vmatpush1.msra.mxu1 %v491_v47  ;;  %v827_v45 = vld [vmem:[%s2073_s5 + $0x38] sm:$0xff]  ;;  %v80_v47 = vsub.s32 0, %v1583_v44 }
  0x3d   :  { %288 = vmatprep.mubr.f32.mxu0 %v1182_v0  ;;  %575 = vmatprep.subr.mxu1 %v490_v48  ;;  %v76_v48 = vld [vmem:[%s2070_s2] sm:$0x3] }
  0x3e   :  { %576 = vmatpush1.msra.mxu1 %v489_v49  ;;  %865 = vmatprep.subr.mxu0 %v1182_v0  ;;  %v825_v49 = vld [vmem:[%s2073_s5 + $0x28] sm:$0xff] }
  0x3f   :  { %577 = vmatprep.subr.mxu1 %v488_v51  ;;  %866 = vmatpush1.msra.mxu0 %v832_v38  ;;  %v824_v51 = vld [vmem:[%s2073_s5 + $0x20] sm:$0xff] }
  0x40   :  { %1106 = vmatmul.mubr.msk.f32.gmra.mxu0 %vm88_vm0, %v53_v50  ;;  %578 = vmatpush1.msra.mxu1 %v487_v52  ;;  %v84_v50 = vsub.s32 1, %v1583_v44  ;;  %v1608_v52 = vrot.slane %v76_v48, %v80_v47 }
  0x41   :  { %294 = vmatprep.mubr.f32.mxu0 %v1182_v0  ;;  %579 = vmatprep.subr.mxu1 %v486_v53  ;;  %v823_v53 = vld [vmem:[%s2073_s5 + $0x18] sm:$0xff] }
  0x42   :  { %580 = vmatpush1.msra.mxu1 %v485_v54  ;;  %867 = vmatprep.subr.mxu0 %v1182_v0  ;;  %v1616_v54 = vrot.slane %v76_v48, %v84_v50 }
  0x43   :  { %581 = vmatprep.subr.mxu1 %v484_v56  ;;  %868 = vmatpush1.msra.mxu0 %v831_v39 }
  0x44   :  { %1107 = vmatmul.mubr.msk.f32.gmra.mxu0 %vm88_vm0, %v54_v55  ;;  %582 = vmatpush1.msra.mxu1 %v483_v57  ;;  %v822_v57 = vld [vmem:[%s2073_s5 + $0x10] sm:$0xff] }
  0x45   :  { %300 = vmatprep.mubr.f32.mxu0 %v1182_v0  ;;  %583 = vmatprep.subr.mxu1 %v482_v58 }
  0x46   :  { %584 = vmatpush1.msra.mxu1 %v481_v59  ;;  %869 = vmatprep.subr.mxu0 %v1182_v0 }
  0x47   :  { %585 = vmatprep.subr.mxu1 %v480_v61  ;;  %870 = vmatpush1.msra.mxu0 %v830_v40 }
  0x48   :  { %1108 = vmatmul.mubr.msk.f32.gmra.mxu0 %vm88_vm0, %v55_v60  ;;  %586 = vmatpush1.msra.mxu1 %v479_v62  ;;  %v821_v62 = vld [vmem:[%s2073_s5 + $0x8] sm:$0xff] }
  0x49   :  { %306 = vmatprep.mubr.f32.mxu0 %v1182_v0  ;;  %587 = vmatprep.subr.mxu1 %v542_v63 }
  0x4a   :  { %588 = vmatpush2.msra.mxu1 %v541_v1  ;;  %871 = vmatprep.subr.mxu0 %v1182_v0 }
  0x4b   :  { %589 = vmatprep.subr.mxu1 %v540_v3  ;;  %872 = vmatpush1.msra.mxu0 %v829_v42 }
  0x4c   :  { %1109 = vmatmul.mubr.msk.f32.gmra.mxu0 %vm88_vm0, %v56_v2  ;;  %590 = vmatpush2.msra.mxu1 %v539_v4 }
  0x4d   :  { %312 = vmatprep.mubr.f32.mxu0 %v1182_v0  ;;  %591 = vmatprep.subr.mxu1 %v538_v5 }
  0x4e   :  { %592 = vmatpush2.msra.mxu1 %v537_v6  ;;  %873 = vmatprep.subr.mxu0 %v1182_v0  ;;  %v820_v6 = vld [vmem:[%s2073_s5] sm:$0xff] }
  0x4f   :  { %593 = vmatprep.subr.mxu1 %v536_v8  ;;  %874 = vmatpush1.msra.mxu0 %v828_v43 }
  0x50   :  { %1110 = vmatmul.mubr.msk.f32.gmra.mxu0 %vm88_vm0, %v57_v7  ;;  %594 = vmatpush2.msra.mxu1 %v535_v9 }
  0x51   :  { %318 = vmatprep.mubr.f32.mxu0 %v1182_v0  ;;  %595 = vmatprep.subr.mxu1 %v534_v10 }
  0x52   :  { %596 = vmatpush2.msra.mxu1 %v533_v11  ;;  %875 = vmatprep.subr.mxu0 %v1182_v0 }
  0x53   :  { %597 = vmatprep.subr.mxu1 %v532_v13  ;;  %876 = vmatpush1.msra.mxu0 %v827_v45  ;;  %v851_v13 = vld [vmem:[%s2073_s5 + $0xf8] sm:$0xff] }
  0x54   :  { %1111 = vmatmul.mubr.msk.f32.gmra.mxu0 %vm88_vm0, %v58_v12  ;;  %598 = vmatpush2.msra.mxu1 %v531_v14 }
  0x55   :  { %599 = vmatprep.subr.mxu1 %v530_v15  ;;  %877 = vmatprep.subr.mxu0 %v1182_v0 }
  0x56   :  { %600 = vmatpush2.msra.mxu1 %v529_v16  ;;  %878 = vmatpush1.msra.mxu0 %v826_v46 }
  0x57   :  { %601 = vmatprep.subr.mxu1 %v528_v17  ;;  %879 = vmatprep.subr.mxu0 %v1182_v0 }
  0x58   :  { %602 = vmatpush2.msra.mxu1 %v527_v18  ;;  %880 = vmatpush1.msra.mxu0 %v825_v49 }
  0x59   :  { %603 = vmatprep.subr.mxu1 %v526_v19  ;;  %881 = vmatprep.subr.mxu0 %v1182_v0 }
  0x5a   :  { %604 = vmatpush2.msra.mxu1 %v525_v20  ;;  %882 = vmatpush1.msra.mxu0 %v824_v51  ;;  %v850_v20 = vld [vmem:[%s2073_s5 + $0xf0] sm:$0xff] }
  0x5b   :  { %605 = vmatprep.subr.mxu1 %v524_v21  ;;  %883 = vmatprep.subr.mxu0 %v1182_v0  ;;  %v846_v51 = vld [vmem:[%s2073_s5 + $0xd0] sm:$0xff] }
  0x5c   :  { %606 = vmatpush2.msra.mxu1 %v523_v22  ;;  %884 = vmatpush1.msra.mxu0 %v823_v53 }
  0x5d   :  { %607 = vmatprep.subr.mxu1 %v522_v23  ;;  %885 = vmatprep.subr.mxu0 %v1182_v0 }
  0x5e   :  { %608 = vmatpush2.msra.mxu1 %v521_v24  ;;  %886 = vmatpush1.msra.mxu0 %v822_v57 }
  0x5f   :  { %609 = vmatprep.subr.mxu1 %v520_v25  ;;  %887 = vmatprep.subr.mxu0 %v1182_v0 }
  0x60   :  { %610 = vmatpush2.msra.mxu1 %v519_v26  ;;  %888 = vmatpush1.msra.mxu0 %v821_v62 }
  0x61   :  { %611 = vmatprep.subr.mxu1 %v518_v27  ;;  %889 = vmatprep.subr.mxu0 %v1182_v0  ;;  %v849_v27 = vld [vmem:[%s2073_s5 + $0xe8] sm:$0xff] }
  0x62   :  { %612 = vmatpush2.msra.mxu1 %v517_v28  ;;  %890 = vmatpush1.msra.mxu0 %v820_v6 }
  0x63   :  { %613 = vmatprep.subr.mxu1 %v516_v29  ;;  %891 = vmatprep.subr.mxu0 %v1182_v0 }
  0x64   :  { %614 = vmatpush2.msra.mxu1 %v515_v30  ;;  %892 = vmatpush2.msra.mxu0 %v851_v13 }
  0x65   :  { %615 = vmatprep.subr.mxu1 %v514_v31  ;;  %893 = vmatprep.subr.mxu0 %v1182_v0 }
  0x66   :  { %616 = vmatpush2.msra.mxu1 %v513_v32  ;;  %894 = vmatpush2.msra.mxu0 %v850_v20 }
  0x67   :  { %617 = vmatprep.subr.mxu1 %v512_v33  ;;  %895 = vmatprep.subr.mxu0 %v1182_v0 }
  0x68   :  { %618 = vmatpush2.msra.mxu1 %v511_v34  ;;  %v848_v34 = vld [vmem:[%s2073_s5 + $0xe0] sm:$0xff]  ;;  %896 = vmatpush2.msra.mxu0 %v849_v27  ;;  %v842_v27 = vld [vmem:[%s2073_s5 + $0xb0] sm:$0xff] }
  0x69   :  { %897 = vmatprep.subr.mxu0 %v1182_v0 }
  0x6a   :  { %898 = vmatpush2.msra.mxu0 %v848_v34 }
  0x6b   :  { %899 = vmatprep.subr.mxu0 %v1182_v0 }
  0x6c   :  { %900 = vmatpush2.msra.mxu0 %v847_v41 }
  0x6d   :  { %901 = vmatprep.subr.mxu0 %v1182_v0 }
  0x6e   :  { %902 = vmatpush2.msra.mxu0 %v846_v51 }
  0x6f   :  { %903 = vmatprep.subr.mxu0 %v1182_v0 }
  0xd8   :  { %v230_v55 = vpop.f32.mrf.mxu0  ;;  %v326_v56 = vpop.f32.mrf.mxu1 }
  0xd9   :  { %v231_v58 = vadd.f32 %v230_v55, %v1608_v52  ;;  %v1624_v59 = vadd.f32 %v326_v56, %v1608_v52 }
  0xda   :  { %v232_v60 = vpop.f32.mrf.mxu0  ;;  %v328_v61 = vpop.f32.mrf.mxu1 }
  0xdb   :  { %v379_v63 = vmax.f32 %v231_v58, 0.0  ;;  %v233_v1 = vadd.f32 %v232_v60, %v1616_v54  ;;  %v411_v2 = vmax.f32 %v1624_v59, 0.0  ;;  %v1633_v3 = vadd.f32 %v328_v61, %v1616_v54  ;;  %v845_v61 = vld [vmem:[%s2073_s5 + $0xc8] sm:$0xff] }
  0xdc   :  { %v236_v4 = vpop.f32.mrf.mxu0  ;;  %v332_v5 = vpop.f32.mrf.mxu1  ;;  %904 = vmatpush2.msra.mxu0 %v845_v61  ;;  %v837_v59 = vld [vmem:[%s2073_s5 + $0x88] sm:$0xff] }
  0xdd   :  { %429 = vst [vmem:[#allocation5] sm:$0xff] %v379_v63  ;;  %v380_v7 = vmax.f32 %v233_v1, 0.0  ;;  %v237_v8 = vadd.f32 %v236_v4, %v1608_v52  ;;  %461 = vst [vmem:[#allocation5 + $0x100] sm:$0xff] %v411_v2  ;;  %v412_v9 = vmax.f32 %v1633_v3, 0.0  ;;  %v1644_v10 = vadd.f32 %v332_v5, %v1608_v52  ;;  %905 = vmatprep.subr.mxu0 %v1182_v0 }
  0xde   :  { %v238_v11 = vpop.f32.mrf.mxu0  ;;  %v334_v12 = vpop.f32.mrf.mxu1 }
  0xdf   :  { %430 = vst [vmem:[#allocation5 + $0x8] sm:$0xff] %v380_v7  ;;  %v381_v14 = vmax.f32 %v237_v8, 0.0  ;;  %v239_v15 = vadd.f32 %v238_v11, %v1616_v54  ;;  %619 = vmatprep.mubr.f32.mxu1 %v380_v7  ;;  %462 = vst [vmem:[#allocation5 + $0x108] sm:$0xff] %v412_v9  ;;  %v413_v16 = vmax.f32 %v1644_v10, 0.0  ;;  %v1655_v17 = vadd.f32 %v334_v12, %v1616_v54  ;;  %v844_v7 = vld [vmem:[%s2073_s5 + $0xc0] sm:$0xff] }
  0xe0   :  { %v242_v18 = vpop.f32.mrf.mxu0  ;;  %620 = vmatmul.mubr.f32.vlgmr.msra.gmra.mxu1 %v379_v63  ;;  %v338_v19 = vpop.f32.mrf.mxu1  ;;  %906 = vmatpush2.msra.mxu0 %v844_v7 }
  0xe1   :  { %431 = vst [vmem:[#allocation5 + $0x10] sm:$0xff] %v381_v14  ;;  %v382_v21 = vmax.f32 %v239_v15, 0.0  ;;  %v243_v22 = vadd.f32 %v242_v18, %v1608_v52  ;;  %463 = vst [vmem:[#allocation5 + $0x110] sm:$0xff] %v413_v16  ;;  %v414_v23 = vmax.f32 %v1655_v17, 0.0  ;;  %v1666_v24 = vadd.f32 %v338_v19, %v1608_v52  ;;  %v843_v18 = vld [vmem:[%s2073_s5 + $0xb8] sm:$0xff]  ;;  %907 = vmatprep.subr.mxu0 %v1182_v0 }
  0xe2   :  { %v244_v25 = vpop.f32.mrf.mxu0  ;;  %v340_v26 = vpop.f32.mrf.mxu1  ;;  %908 = vmatpush2.msra.mxu0 %v843_v18 }
  0xe3   :  { %432 = vst [vmem:[#allocation5 + $0x18] sm:$0xff] %v382_v21  ;;  %v383_v28 = vmax.f32 %v243_v22, 0.0  ;;  %v245_v29 = vadd.f32 %v244_v25, %v1616_v54  ;;  %625 = vmatprep.mubr.f32.mxu1 %v382_v21  ;;  %464 = vst [vmem:[#allocation5 + $0x118] sm:$0xff] %v414_v23  ;;  %v415_v30 = vmax.f32 %v1666_v24, 0.0  ;;  %v1677_v31 = vadd.f32 %v340_v26, %v1616_v54 }
  0xe4   :  { %v248_v32 = vpop.f32.mrf.mxu0  ;;  %626 = vmatmul.mubr.f32.gmra.mxu1 %v381_v14  ;;  %v344_v33 = vpop.f32.mrf.mxu1  ;;  %909 = vmatprep.subr.mxu0 %v1182_v0 }
  0xe5   :  { %433 = vst [vmem:[#allocation5 + $0x20] sm:$0xff] %v383_v28  ;;  %v384_v35 = vmax.f32 %v245_v29, 0.0  ;;  %v249_v36 = vadd.f32 %v248_v32, %v1608_v52  ;;  %465 = vst [vmem:[#allocation5 + $0x120] sm:$0xff] %v415_v30  ;;  %v416_v37 = vmax.f32 %v1677_v31, 0.0  ;;  %v1688_v38 = vadd.f32 %v344_v33, %v1608_v52  ;;  %910 = vmatpush2.msra.mxu0 %v842_v27 }
  0xe6   :  { %v250_v39 = vpop.f32.mrf.mxu0  ;;  %v346_v40 = vpop.f32.mrf.mxu1  ;;  %911 = vmatprep.subr.mxu0 %v1182_v0 }
  0xe7   :  { %434 = vst [vmem:[#allocation5 + $0x28] sm:$0xff] %v384_v35  ;;  %v385_v42 = vmax.f32 %v249_v36, 0.0  ;;  %v251_v43 = vadd.f32 %v250_v39, %v1616_v54  ;;  %631 = vmatprep.mubr.f32.mxu1 %v384_v35  ;;  %466 = vst [vmem:[#allocation5 + $0x128] sm:$0xff] %v416_v37  ;;  %v417_v45 = vmax.f32 %v1688_v38, 0.0  ;;  %v1699_v46 = vadd.f32 %v346_v40, %v1616_v54  ;;  %v841_v36 = vld [vmem:[%s2073_s5 + $0xa8] sm:$0xff] }
  0xe8   :  { %v254_v48 = vpop.f32.mrf.mxu0  ;;  %632 = vmatmul.mubr.f32.gmra.mxu1 %v383_v28  ;;  %v350_v49 = vpop.f32.mrf.mxu1  ;;  %912 = vmatpush2.msra.mxu0 %v841_v36 }
  0xe9   :  { %435 = vst [vmem:[#allocation5 + $0x30] sm:$0xff] %v385_v42  ;;  %v386_v53 = vmax.f32 %v251_v43, 0.0  ;;  %v255_v55 = vadd.f32 %v254_v48, %v1608_v52  ;;  %467 = vst [vmem:[#allocation5 + $0x130] sm:$0xff] %v417_v45  ;;  %v418_v56 = vmax.f32 %v1699_v46, 0.0  ;;  %v1710_v57 = vadd.f32 %v350_v49, %v1608_v52  ;;  %v840_v49 = vld [vmem:[%s2073_s5 + $0xa0] sm:$0xff]  ;;  %913 = vmatprep.subr.mxu0 %v1182_v0 }
  0xea   :  { %v256_v58 = vpop.f32.mrf.mxu0  ;;  %v352_v60 = vpop.f32.mrf.mxu1  ;;  %914 = vmatpush2.msra.mxu0 %v840_v49 }
  0xeb   :  { %436 = vst [vmem:[#allocation5 + $0x38] sm:$0xff] %v386_v53  ;;  %v387_v62 = vmax.f32 %v255_v55, 0.0  ;;  %v257_v63 = vadd.f32 %v256_v58, %v1616_v54  ;;  %637 = vmatprep.mubr.f32.mxu1 %v386_v53  ;;  %468 = vst [vmem:[#allocation5 + $0x138] sm:$0xff] %v418_v56  ;;  %v419_v1 = vmax.f32 %v1710_v57, 0.0  ;;  %v1721_v4 = vadd.f32 %v352_v60, %v1616_v54 }
  0xec   :  { %v260_v5 = vpop.f32.mrf.mxu0  ;;  %638 = vmatmul.mubr.f32.gmra.mxu1 %v385_v42  ;;  %v356_v6 = vpop.f32.mrf.mxu1  ;;  %915 = vmatprep.subr.mxu0 %v1182_v0 }
  0xed   :  { %437 = vst [vmem:[#allocation5 + $0x40] sm:$0xff] %v387_v62  ;;  %v388_v8 = vmax.f32 %v257_v63, 0.0  ;;  %v261_v11 = vadd.f32 %v260_v5, %v1608_v52  ;;  %469 = vst [vmem:[#allocation5 + $0x140] sm:$0xff] %v419_v1  ;;  %v420_v12 = vmax.f32 %v1721_v4, 0.0  ;;  %v1732_v13 = vadd.f32 %v356_v6, %v1608_v52 }
  0xee   :  { %v262_v14 = vpop.f32.mrf.mxu0  ;;  %v358_v15 = vpop.f32.mrf.mxu1 }
  0xef   :  { %438 = vst [vmem:[#allocation5 + $0x48] sm:$0xff] %v388_v8  ;;  %v389_v19 = vmax.f32 %v261_v11, 0.0  ;;  %v263_v20 = vadd.f32 %v262_v14, %v1616_v54  ;;  %643 = vmatprep.mubr.f32.mxu1 %v388_v8  ;;  %470 = vst [vmem:[#allocation5 + $0x148] sm:$0xff] %v420_v12  ;;  %v421_v21 = vmax.f32 %v1732_v13, 0.0  ;;  %v1743_v22 = vadd.f32 %v358_v15, %v1616_v54 }
  0xf0   :  { %v266_v25 = vpop.f32.mrf.mxu0  ;;  %644 = vmatmul.mubr.f32.gmra.mxu1 %v387_v62  ;;  %v362_v26 = vpop.f32.mrf.mxu1 }
  0xf1   :  { %439 = vst [vmem:[#allocation5 + $0x50] sm:$0xff] %v389_v19  ;;  %v390_v28 = vmax.f32 %v263_v20, 0.0  ;;  %v267_v29 = vadd.f32 %v266_v25, %v1608_v52  ;;  %471 = vst [vmem:[#allocation5 + $0x150] sm:$0xff] %v421_v21  ;;  %v422_v32 = vmax.f32 %v1743_v22, 0.0  ;;  %v1754_v33 = vadd.f32 %v362_v26, %v1608_v52 }
  0xf2   :  { %v268_v34 = vpop.f32.mrf.mxu0  ;;  %v364_v35 = vpop.f32.mrf.mxu1 }
  0xf3   :  { %440 = vst [vmem:[#allocation5 + $0x58] sm:$0xff] %v390_v28  ;;  %v391_v39 = vmax.f32 %v267_v29, 0.0  ;;  %v269_v40 = vadd.f32 %v268_v34, %v1616_v54  ;;  %649 = vmatprep.mubr.f32.mxu1 %v390_v28  ;;  %472 = vst [vmem:[#allocation5 + $0x158] sm:$0xff] %v422_v32  ;;  %v423_v41 = vmax.f32 %v1754_v33, 0.0  ;;  %v1765_v42 = vadd.f32 %v364_v35, %v1616_v54 }
  0xf4   :  { %v272_v43 = vpop.f32.mrf.mxu0  ;;  %650 = vmatmul.mubr.f32.gmra.mxu1 %v389_v19  ;;  %v368_v48 = vpop.f32.mrf.mxu1 }
  0xf5   :  { %441 = vst [vmem:[#allocation5 + $0x60] sm:$0xff] %v391_v39  ;;  %v392_v51 = vmax.f32 %v269_v40, 0.0  ;;  %v273_v53 = vadd.f32 %v272_v43, %v1608_v52  ;;  %473 = vst [vmem:[#allocation5 + $0x160] sm:$0xff] %v423_v41  ;;  %v424_v55 = vmax.f32 %v1765_v42, 0.0  ;;  %v1776_v58 = vadd.f32 %v368_v48, %v1608_v52 }
  0xf6   :  { %v274_v60 = vpop.f32.mrf.mxu0  ;;  %v370_v61 = vpop.f32.mrf.mxu1 }
  0xf7   :  { %442 = vst [vmem:[#allocation5 + $0x68] sm:$0xff] %v392_v51  ;;  %v393_v62 = vmax.f32 %v273_v53, 0.0  ;;  %v275_v63 = vadd.f32 %v274_v60, %v1616_v54  ;;  %655 = vmatprep.mubr.f32.mxu1 %v392_v51  ;;  %474 = vst [vmem:[#allocation5 + $0x168] sm:$0xff] %v424_v55  ;;  %v425_v5 = vmax.f32 %v1776_v58, 0.0  ;;  %v1784_v6 = vadd.f32 %v370_v61, %v1616_v54 }
  0xf8   :  { %v278_v7 = vpop.f32.mrf.mxu0  ;;  %656 = vmatmul.mubr.f32.gmra.mxu1 %v391_v39  ;;  %v374_v8 = vpop.f32.mrf.mxu1 }
  0xf9   :  { %443 = vst [vmem:[#allocation5 + $0x70] sm:$0xff] %v393_v62  ;;  %v394_v11 = vmax.f32 %v275_v63, 0.0  ;;  %v279_v14 = vadd.f32 %v278_v7, %v1608_v52  ;;  %475 = vst [vmem:[#allocation5 + $0x170] sm:$0xff] %v425_v5  ;;  %v426_v15 = vmax.f32 %v1784_v6, 0.0  ;;  %v1792_v18 = vadd.f32 %v374_v8, %v1608_v52 }
  0xfa   :  { %v280_v19 = vpop.f32.mrf.mxu0  ;;  %v376_v20 = vpop.f32.mrf.mxu1 }
  0xfb   :  { %444 = vst [vmem:[#allocation5 + $0x78] sm:$0xff] %v394_v11  ;;  %v395_v25 = vmax.f32 %v279_v14, 0.0  ;;  %v281_v26 = vadd.f32 %v280_v19, %v1616_v54  ;;  %661 = vmatprep.mubr.f32.mxu1 %v394_v11  ;;  %476 = vst [vmem:[#allocation5 + $0x178] sm:$0xff] %v426_v15  ;;  %v427_v27 = vmax.f32 %v1792_v18, 0.0  ;;  %v1799_v28 = vadd.f32 %v376_v20, %v1616_v54 }
  0xfc   :  { %v284_v29 = vpop.f32.mrf.mxu0  ;;  %662 = vmatmul.mubr.f32.gmra.mxu1 %v393_v62 }
  0xfd   :  { %445 = vst [vmem:[#allocation5 + $0x80] sm:$0xff] %v395_v25  ;;  %v396_v34 = vmax.f32 %v281_v26, 0.0  ;;  %v285_v35 = vadd.f32 %v284_v29, %v1608_v52  ;;  %477 = vst [vmem:[#allocation5 + $0x180] sm:$0xff] %v427_v27  ;;  %v428_v36 = vmax.f32 %v1799_v28, 0.0 }
  0xfe   :  { %v286_v39 = vpop.f32.mrf.mxu0 }
  0xff   :  { %446 = vst [vmem:[#allocation5 + $0x88] sm:$0xff] %v396_v34  ;;  %v397_v40 = vmax.f32 %v285_v35, 0.0  ;;  %v287_v43 = vadd.f32 %v286_v39, %v1616_v54  ;;  %667 = vmatprep.mubr.f32.mxu1 %v396_v34  ;;  %478 = vst [vmem:[#allocation5 + $0x188] sm:$0xff] %v428_v36 }
 0x100   :  { %v290_v48 = vpop.f32.mrf.mxu0  ;;  %668 = vmatmul.mubr.f32.gmra.mxu1 %v395_v25 }
 0x101   :  { %447 = vst [vmem:[#allocation5 + $0x90] sm:$0xff] %v397_v40  ;;  %v398_v49 = vmax.f32 %v287_v43, 0.0  ;;  %v291_v51 = vadd.f32 %v290_v48, %v1608_v52 }
 0x102   :  { %v292_v53 = vpop.f32.mrf.mxu0 }
 0x103   :  { %448 = vst [vmem:[#allocation5 + $0x98] sm:$0xff] %v398_v49  ;;  %v399_v60 = vmax.f32 %v291_v51, 0.0  ;;  %v293_v61 = vadd.f32 %v292_v53, %v1616_v54  ;;  %673 = vmatprep.mubr.f32.mxu1 %v398_v49 }
 0x104   :  { %v296_v62 = vpop.f32.mrf.mxu0  ;;  %674 = vmatmul.mubr.f32.gmra.mxu1 %v397_v40 }
 0x105   :  { %449 = vst [vmem:[#allocation5 + $0xa0] sm:$0xff] %v399_v60  ;;  %v400_v63 = vmax.f32 %v293_v61, 0.0  ;;  %v297_v7 = vadd.f32 %v296_v62, %v1608_v52 }
 0x106   :  { %v298_v8 = vpop.f32.mrf.mxu0 }
 0x107   :  { %450 = vst [vmem:[#allocation5 + $0xa8] sm:$0xff] %v400_v63  ;;  %v401_v11 = vmax.f32 %v297_v7, 0.0  ;;  %v299_v14 = vadd.f32 %v298_v8, %v1616_v54  ;;  %679 = vmatprep.mubr.f32.mxu1 %v400_v63 }
 0x108   :  { %v302_v19 = vpop.f32.mrf.mxu0  ;;  %680 = vmatmul.mubr.f32.gmra.mxu1 %v399_v60 }
 0x109   :  { %451 = vst [vmem:[#allocation5 + $0xb0] sm:$0xff] %v401_v11  ;;  %v402_v20 = vmax.f32 %v299_v14, 0.0  ;;  %v303_v25 = vadd.f32 %v302_v19, %v1608_v52 }
 0x10a   :  { %v304_v26 = vpop.f32.mrf.mxu0 }
 0x10b   :  { %452 = vst [vmem:[#allocation5 + $0xb8] sm:$0xff] %v402_v20  ;;  %v403_v29 = vmax.f32 %v303_v25, 0.0  ;;  %v305_v34 = vadd.f32 %v304_v26, %v1616_v54  ;;  %685 = vmatprep.mubr.f32.mxu1 %v402_v20 }
 0x10c   :  { %v308_v35 = vpop.f32.mrf.mxu0  ;;  %686 = vmatmul.mubr.f32.gmra.mxu1 %v401_v11 }
 0x10d   :  { %453 = vst [vmem:[#allocation5 + $0xc0] sm:$0xff] %v403_v29  ;;  %v404_v39 = vmax.f32 %v305_v34, 0.0  ;;  %v309_v40 = vadd.f32 %v308_v35, %v1608_v52 }
 0x10e   :  { %v310_v43 = vpop.f32.mrf.mxu0 }
 0x10f   :  { %454 = vst [vmem:[#allocation5 + $0xc8] sm:$0xff] %v404_v39  ;;  %v405_v48 = vmax.f32 %v309_v40, 0.0  ;;  %v311_v49 = vadd.f32 %v310_v43, %v1616_v54  ;;  %691 = vmatprep.mubr.f32.mxu1 %v404_v39 }
 0x110   :  { %v314_v51 = vpop.f32.mrf.mxu0  ;;  %692 = vmatmul.mubr.f32.gmra.mxu1 %v403_v29 }
 0x111   :  { %455 = vst [vmem:[#allocation5 + $0xd0] sm:$0xff] %v405_v48  ;;  %v406_v53 = vmax.f32 %v311_v49, 0.0  ;;  %v315_v60 = vadd.f32 %v314_v51, %v1608_v52 }
 0x112   :  { %v316_v61 = vpop.f32.mrf.mxu0 }
 0x113   :  { %456 = vst [vmem:[#allocation5 + $0xd8] sm:$0xff] %v406_v53  ;;  %v407_v62 = vmax.f32 %v315_v60, 0.0  ;;  %v317_v63 = vadd.f32 %v316_v61, %v1616_v54  ;;  %697 = vmatprep.mubr.f32.mxu1 %v406_v53 }
 0x114   :  { %v320_v7 = vpop.f32.mrf.mxu0  ;;  %698 = vmatmul.mubr.f32.gmra.mxu1 %v405_v48 }
 0x115   :  { %457 = vst [vmem:[#allocation5 + $0xe0] sm:$0xff] %v407_v62  ;;  %v408_v8 = vmax.f32 %v317_v63, 0.0  ;;  %v321_v11 = vadd.f32 %v320_v7, %v1608_v52  ;;  %v839_v52 = vld [vmem:[%s2073_s5 + $0x98] sm:$0xff] }
 0x116   :  { %v322_v14 = vpop.f32.mrf.mxu0  ;;  %916 = vmatpush2.msra.mxu0 %v839_v52 }
 0x117   :  { %458 = vst [vmem:[#allocation5 + $0xe8] sm:$0xff] %v408_v8  ;;  %v409_v19 = vmax.f32 %v321_v11, 0.0  ;;  %v323_v20 = vadd.f32 %v322_v14, %v1616_v54  ;;  %703 = vmatprep.mubr.f32.mxu1 %v408_v8  ;;  %917 = vmatprep.subr.mxu0 %v1182_v0  ;;  %v838_v54 = vld [vmem:[%s2073_s5 + $0x90] sm:$0xff] }
 0x118   :  { %704 = vmatmul.mubr.f32.gmra.mxu1 %v407_v62  ;;  %918 = vmatpush2.msra.mxu0 %v838_v54 }
 0x119   :  { %459 = vst [vmem:[#allocation5 + $0xf0] sm:$0xff] %v409_v19  ;;  %v410_v25 = vmax.f32 %v323_v20, 0.0  ;;  %919 = vmatprep.subr.mxu0 %v1182_v0 }
 0x11a   :  { %920 = vmatpush2.msra.mxu0 %v837_v59 }
 0x11b   :  { %460 = vst [vmem:[#allocation5 + $0xf8] sm:$0xff] %v410_v25  ;;  %709 = vmatprep.mubr.f32.mxu1 %v410_v25  ;;  %921 = vmatprep.subr.mxu0 %v1182_v0  ;;  %v543_v0 = vld [vmem:[%s2072_s4] sm:$0x3]  ;;  %s1183_s4 = smov [#allocation5]  }
 0x11c   :  { %710 = vmatmul.mubr.f32.gmra.mxu1 %v409_v19  ;;  %v1876_v3 = vrot.slane %v543_v0, %v80_v47  ;;  %s1082_s15 = sshll.u32 %s1183_s4, 4  ;;  %s1083_s15 = int_to_ptr.vmem [resolvable:$true] %s1082_s15 }
 0x11d   :  { %715 = vmatprep.mubr.f32.mxu1 %v412_v9  ;;  %v1880_v9 = vrot.slane %v543_v0, %v84_v50  ;;  %s1155_s16 = scalar_lea.vmem %s1083_s15, 6400  ;;  %p1160_p6 = scmp.lt.s32.totalorder %s1083_s15, %s1083_s15 }
 0x11e   :  { %p1156_p5 = scmp.ne.s32.totalorder %s1083_s15, %s1155_s16  ;;  %p1161_p7 = scmp.lt.s32.totalorder %s1155_s16, %s1155_s16 }
 0x120   :  { %716 = vmatmul.mubr.f32.gmra.mxu1 %v411_v2  ;;  %v836_v2 = vld [vmem:[%s2073_s5 + $0x80] sm:$0xff]  ;;  %p1162_p8 = por %p1161_p7, %p1160_p6 }
 0x121   :  { %721 = vmatprep.mubr.f32.mxu1 %v414_v23  ;;  %922 = vmatpush2.msra.mxu0 %v836_v2 }
 0x122   :  { %p1163_p9 = pnand %p1162_p8, %p1156_p5 }
 0x124   :  { %722 = vmatmul.mubr.f32.gmra.mxu1 %v413_v16 }
 0x125   :  { %727 = vmatprep.mubr.f32.mxu1 %v416_v37 }
 0x128   :  { %728 = vmatmul.mubr.f32.gmra.mxu1 %v415_v30 }
 0x129   :  { %733 = vmatprep.mubr.f32.mxu1 %v418_v56 }
 0x12c   :  { %734 = vmatmul.mubr.f32.gmra.mxu1 %v417_v45 }
 0x12d   :  { %739 = vmatprep.mubr.f32.mxu1 %v420_v12 }
 0x130   :  { %740 = vmatmul.mubr.f32.gmra.mxu1 %v419_v1 }
 0x131   :  { %745 = vmatprep.mubr.f32.mxu1 %v422_v32 }
 0x134   :  { %746 = vmatmul.mubr.f32.gmra.mxu1 %v421_v21 }
 0x135   :  { %751 = vmatprep.mubr.f32.mxu1 %v424_v55 }
 0x138   :  { %752 = vmatmul.mubr.f32.gmra.mxu1 %v423_v41 }
 0x139   :  { %757 = vmatprep.mubr.f32.mxu1 %v426_v15 }
 0x13c   :  { %758 = vmatmul.mubr.f32.gmra.mxu1 %v425_v5 }
 0x13d   :  { %763 = vmatprep.mubr.f32.mxu1 %v428_v36 }
 0x140   :  { %764 = vmatmul.mubr.f32.gmra.mxu1 %v427_v27 }
 0x1a0   :  { %v621_v10 = vpop.f32.mrf.mxu1 }
 0x1a1   :  { %v622_v16 = vadd.f32 %v621_v10, %v1876_v3 }
 0x1a2   :  { %v623_v17 = vpop.f32.mrf.mxu1 }
 0x1a3   :  { %v624_v23 = vadd.f32 %v623_v17, %v1880_v9  ;;  %v770_v31 = vmax.f32 %v622_v16, 0.0 }
 0x1a4   :  { %v627_v24 = vpop.f32.mrf.mxu1 }
 0x1a5   :  { %v771_v30 = vmax.f32 %v624_v23, 0.0  ;;  %v628_v37 = vadd.f32 %v627_v24, %v1876_v3 }
 0x1a6   :  { %v629_v38 = vpop.f32.mrf.mxu1 }
 0x1a7   :  { %v630_v45 = vadd.f32 %v629_v38, %v1880_v9  ;;  %923 = vmatprep.mubr.f32.mxu0 %v771_v30  ;;  %v772_v50 = vmax.f32 %v628_v37, 0.0 }
 0x1a8   :  { %v633_v47 = vpop.f32.mrf.mxu1  ;;  %924 = vmatmul.mubr.f32.vlgmr.msra.gmra.mxu0 %v770_v31 }
 0x1a9   :  { %v773_v44 = vmax.f32 %v630_v45, 0.0  ;;  %v634_v46 = vadd.f32 %v633_v47, %v1876_v3 }
 0x1aa   :  { %v635_v56 = vpop.f32.mrf.mxu1 }
 0x1ab   :  { %v636_v57 = vadd.f32 %v635_v56, %v1880_v9  ;;  %928 = vmatprep.mubr.f32.mxu0 %v773_v44  ;;  %v774_v12 = vmax.f32 %v634_v46, 0.0 }
 0x1ac   :  { %v639_v1 = vpop.f32.mrf.mxu1  ;;  %929 = vmatmul.mubr.f32.gmra.mxu0 %v772_v50 }
 0x1ad   :  { %v775_v4 = vmax.f32 %v636_v57, 0.0  ;;  %v640_v13 = vadd.f32 %v639_v1, %v1876_v3 }
 0x1ae   :  { %v641_v21 = vpop.f32.mrf.mxu1 }
 0x1af   :  { %v642_v22 = vadd.f32 %v641_v21, %v1880_v9  ;;  %933 = vmatprep.mubr.f32.mxu0 %v775_v4  ;;  %v776_v41 = vmax.f32 %v640_v13, 0.0 }
 0x1b0   :  { %v645_v32 = vpop.f32.mrf.mxu1  ;;  %934 = vmatmul.mubr.f32.gmra.mxu0 %v774_v12 }
 0x1b1   :  { %v777_v33 = vmax.f32 %v642_v22, 0.0  ;;  %v646_v42 = vadd.f32 %v645_v32, %v1876_v3 }
 0x1b2   :  { %v647_v55 = vpop.f32.mrf.mxu1 }
 0x1b3   :  { %v648_v58 = vadd.f32 %v647_v55, %v1880_v9  ;;  %938 = vmatprep.mubr.f32.mxu0 %v777_v33  ;;  %v778_v15 = vmax.f32 %v646_v42, 0.0 }
 0x1b4   :  { %v651_v5 = vpop.f32.mrf.mxu1  ;;  %939 = vmatmul.mubr.f32.gmra.mxu0 %v776_v41 }
 0x1b5   :  { %v779_v6 = vmax.f32 %v648_v58, 0.0  ;;  %v652_v18 = vadd.f32 %v651_v5, %v1876_v3 }
 0x1b6   :  { %v653_v27 = vpop.f32.mrf.mxu1 }
 0x1b7   :  { %v654_v28 = vadd.f32 %v653_v27, %v1880_v9  ;;  %943 = vmatprep.mubr.f32.mxu0 %v779_v6  ;;  %v780_v29 = vmax.f32 %v652_v18, 0.0 }
 0x1b8   :  { %v657_v36 = vpop.f32.mrf.mxu1  ;;  %944 = vmatmul.mubr.f32.gmra.mxu0 %v778_v15 }
 0x1b9   :  { %v781_v26 = vmax.f32 %v654_v28, 0.0  ;;  %v658_v34 = vadd.f32 %v657_v36, %v1876_v3 }
 0x1ba   :  { %v659_v35 = vpop.f32.mrf.mxu1 }
 0x1bb   :  { %v660_v39 = vadd.f32 %v659_v35, %v1880_v9  ;;  %948 = vmatprep.mubr.f32.mxu0 %v781_v26  ;;  %v782_v48 = vmax.f32 %v658_v34, 0.0 }
 0x1bc   :  { %v663_v40 = vpop.f32.mrf.mxu1  ;;  %949 = vmatmul.mubr.f32.gmra.mxu0 %v780_v29 }
 0x1bd   :  { %v783_v43 = vmax.f32 %v660_v39, 0.0  ;;  %v664_v49 = vadd.f32 %v663_v40, %v1876_v3 }
 0x1be   :  { %v665_v51 = vpop.f32.mrf.mxu1 }
 0x1bf   :  { %v666_v53 = vadd.f32 %v665_v51, %v1880_v9  ;;  %953 = vmatprep.mubr.f32.mxu0 %v783_v43  ;;  %v784_v62 = vmax.f32 %v664_v49, 0.0 }
 0x1c0   :  { %v669_v60 = vpop.f32.mrf.mxu1  ;;  %954 = vmatmul.mubr.f32.gmra.mxu0 %v782_v48 }
 0x1c1   :  { %v785_v61 = vmax.f32 %v666_v53, 0.0  ;;  %v670_v63 = vadd.f32 %v669_v60, %v1876_v3 }
 0x1c2   :  { %v671_v7 = vpop.f32.mrf.mxu1 }
 0x1c3   :  { %v672_v8 = vadd.f32 %v671_v7, %v1880_v9  ;;  %958 = vmatprep.mubr.f32.mxu0 %v785_v61  ;;  %v786_v19 = vmax.f32 %v670_v63, 0.0 }
 0x1c4   :  { %v675_v11 = vpop.f32.mrf.mxu1  ;;  %959 = vmatmul.mubr.f32.gmra.mxu0 %v784_v62 }
 0x1c5   :  { %v787_v14 = vmax.f32 %v672_v8, 0.0  ;;  %v676_v20 = vadd.f32 %v675_v11, %v1876_v3 }
 0x1c6   :  { %v677_v25 = vpop.f32.mrf.mxu1 }
 0x1c7   :  { %v678_v52 = vadd.f32 %v677_v25, %v1880_v9  ;;  %963 = vmatprep.mubr.f32.mxu0 %v787_v14  ;;  %v788_v2 = vmax.f32 %v676_v20, 0.0 }
 0x1c8   :  { %v681_v54 = vpop.f32.mrf.mxu1  ;;  %964 = vmatmul.mubr.f32.gmra.mxu0 %v786_v19 }
 0x1c9   :  { %v789_v59 = vmax.f32 %v678_v52, 0.0  ;;  %v682_v0 = vadd.f32 %v681_v54, %v1876_v3 }
 0x1ca   :  { %v683_v10 = vpop.f32.mrf.mxu1 }
 0x1cb   :  { %v684_v16 = vadd.f32 %v683_v10, %v1880_v9  ;;  %968 = vmatprep.mubr.f32.mxu0 %v789_v59  ;;  %v790_v24 = vmax.f32 %v682_v0, 0.0 }
 0x1cc   :  { %v687_v17 = vpop.f32.mrf.mxu1  ;;  %969 = vmatmul.mubr.f32.gmra.mxu0 %v788_v2 }
 0x1cd   :  { %v791_v23 = vmax.f32 %v684_v16, 0.0  ;;  %v688_v30 = vadd.f32 %v687_v17, %v1876_v3 }
 0x1ce   :  { %v689_v31 = vpop.f32.mrf.mxu1 }
 0x1cf   :  { %v690_v37 = vadd.f32 %v689_v31, %v1880_v9  ;;  %973 = vmatprep.mubr.f32.mxu0 %v791_v23  ;;  %v792_v47 = vmax.f32 %v688_v30, 0.0 }
 0x1d0   :  { %v693_v38 = vpop.f32.mrf.mxu1  ;;  %974 = vmatmul.mubr.f32.gmra.mxu0 %v790_v24 }
 0x1d1   :  { %v793_v45 = vmax.f32 %v690_v37, 0.0  ;;  %v694_v44 = vadd.f32 %v693_v38, %v1876_v3 }
 0x1d2   :  { %v695_v50 = vpop.f32.mrf.mxu1 }
 0x1d3   :  { %v696_v46 = vadd.f32 %v695_v50, %v1880_v9  ;;  %978 = vmatprep.mubr.f32.mxu0 %v793_v45  ;;  %v794_v1 = vmax.f32 %v694_v44, 0.0 }
 0x1d4   :  { %v699_v56 = vpop.f32.mrf.mxu1  ;;  %979 = vmatmul.mubr.f32.gmra.mxu0 %v792_v47 }
 0x1d5   :  { %v795_v57 = vmax.f32 %v696_v46, 0.0  ;;  %v700_v4 = vadd.f32 %v699_v56, %v1876_v3 }
 0x1d6   :  { %v701_v12 = vpop.f32.mrf.mxu1 }
 0x1d7   :  { %v702_v13 = vadd.f32 %v701_v12, %v1880_v9  ;;  %983 = vmatprep.mubr.f32.mxu0 %v795_v57  ;;  %v796_v32 = vmax.f32 %v700_v4, 0.0 }
 0x1d8   :  { %v705_v21 = vpop.f32.mrf.mxu1  ;;  %984 = vmatmul.mubr.f32.gmra.mxu0 %v794_v1 }
 0x1d9   :  { %v797_v22 = vmax.f32 %v702_v13, 0.0  ;;  %v706_v33 = vadd.f32 %v705_v21, %v1876_v3 }
 0x1da   :  { %v707_v41 = vpop.f32.mrf.mxu1 }
 0x1db   :  { %v708_v42 = vadd.f32 %v707_v41, %v1880_v9  ;;  %988 = vmatprep.mubr.f32.mxu0 %v797_v22  ;;  %v798_v5 = vmax.f32 %v706_v33, 0.0 }
 0x1dc   :  { %v711_v55 = vpop.f32.mrf.mxu1  ;;  %989 = vmatmul.mubr.f32.gmra.mxu0 %v796_v32 }
 0x1dd   :  { %v799_v58 = vmax.f32 %v708_v42, 0.0  ;;  %v712_v6 = vadd.f32 %v711_v55, %v1876_v3 }
 0x1de   :  { %v713_v15 = vpop.f32.mrf.mxu1 }
 0x1df   :  { %v714_v18 = vadd.f32 %v713_v15, %v1880_v9  ;;  %993 = vmatprep.mubr.f32.mxu0 %v799_v58  ;;  %v800_v36 = vmax.f32 %v712_v6, 0.0 }
 0x1e0   :  { %v717_v27 = vpop.f32.mrf.mxu1  ;;  %994 = vmatmul.mubr.f32.gmra.mxu0 %v798_v5 }
 0x1e1   :  { %v801_v28 = vmax.f32 %v714_v18, 0.0  ;;  %v718_v26 = vadd.f32 %v717_v27, %v1876_v3 }
 0x1e2   :  { %v719_v29 = vpop.f32.mrf.mxu1 }
 0x1e3   :  { %v720_v34 = vadd.f32 %v719_v29, %v1880_v9  ;;  %998 = vmatprep.mubr.f32.mxu0 %v801_v28  ;;  %v802_v40 = vmax.f32 %v718_v26, 0.0 }
 0x1e4   :  { %v723_v35 = vpop.f32.mrf.mxu1  ;;  %999 = vmatmul.mubr.f32.gmra.mxu0 %v800_v36 }
 0x1e5   :  { %v803_v39 = vmax.f32 %v720_v34, 0.0  ;;  %v724_v43 = vadd.f32 %v723_v35, %v1876_v3 }
 0x1e6   :  { %v725_v48 = vpop.f32.mrf.mxu1 }
 0x1e7   :  { %v726_v49 = vadd.f32 %v725_v48, %v1880_v9  ;;  %1003 = vmatprep.mubr.f32.mxu0 %v803_v39  ;;  %v804_v60 = vmax.f32 %v724_v43, 0.0 }
 0x1e8   :  { %v729_v51 = vpop.f32.mrf.mxu1  ;;  %1004 = vmatmul.mubr.f32.gmra.mxu0 %v802_v40 }
 0x1e9   :  { %v805_v53 = vmax.f32 %v726_v49, 0.0  ;;  %v730_v61 = vadd.f32 %v729_v51, %v1876_v3 }
 0x1ea   :  { %v731_v62 = vpop.f32.mrf.mxu1 }
 0x1eb   :  { %v732_v63 = vadd.f32 %v731_v62, %v1880_v9  ;;  %1008 = vmatprep.mubr.f32.mxu0 %v805_v53  ;;  %v806_v11 = vmax.f32 %v730_v61, 0.0 }
 0x1ec   :  { %v735_v7 = vpop.f32.mrf.mxu1  ;;  %1009 = vmatmul.mubr.f32.gmra.mxu0 %v804_v60 }
 0x1ed   :  { %v807_v8 = vmax.f32 %v732_v63, 0.0  ;;  %v736_v14 = vadd.f32 %v735_v7, %v1876_v3 }
 0x1ee   :  { %v737_v19 = vpop.f32.mrf.mxu1 }
 0x1ef   :  { %v738_v20 = vadd.f32 %v737_v19, %v1880_v9  ;;  %1013 = vmatprep.mubr.f32.mxu0 %v807_v8  ;;  %v808_v54 = vmax.f32 %v736_v14, 0.0 }
 0x1f0   :  { %v741_v25 = vpop.f32.mrf.mxu1  ;;  %1014 = vmatmul.mubr.f32.gmra.mxu0 %v806_v11 }
 0x1f1   :  { %v809_v52 = vmax.f32 %v738_v20, 0.0  ;;  %v742_v59 = vadd.f32 %v741_v25, %v1876_v3 }
 0x1f2   :  { %v743_v2 = vpop.f32.mrf.mxu1 }
 0x1f3   :  { %v744_v0 = vadd.f32 %v743_v2, %v1880_v9  ;;  %1018 = vmatprep.mubr.f32.mxu0 %v809_v52  ;;  %v810_v17 = vmax.f32 %v742_v59, 0.0 }
 0x1f4   :  { %v747_v10 = vpop.f32.mrf.mxu1  ;;  %1019 = vmatmul.mubr.f32.gmra.mxu0 %v808_v54 }
 0x1f5   :  { %v811_v16 = vmax.f32 %v744_v0, 0.0  ;;  %v748_v23 = vadd.f32 %v747_v10, %v1876_v3 }
 0x1f6   :  { %v749_v24 = vpop.f32.mrf.mxu1 }
 0x1f7   :  { %v750_v30 = vadd.f32 %v749_v24, %v1880_v9  ;;  %1023 = vmatprep.mubr.f32.mxu0 %v811_v16  ;;  %v812_v38 = vmax.f32 %v748_v23, 0.0 }
 0x1f8   :  { %v753_v31 = vpop.f32.mrf.mxu1  ;;  %1024 = vmatmul.mubr.f32.gmra.mxu0 %v810_v17 }
 0x1f9   :  { %v813_v37 = vmax.f32 %v750_v30, 0.0  ;;  %v754_v45 = vadd.f32 %v753_v31, %v1876_v3 }
 0x1fa   :  { %v755_v47 = vpop.f32.mrf.mxu1 }
 0x1fb   :  { %v756_v44 = vadd.f32 %v755_v47, %v1880_v9  ;;  %1028 = vmatprep.mubr.f32.mxu0 %v813_v37  ;;  %v814_v56 = vmax.f32 %v754_v45, 0.0 }
 0x1fc   :  { %v759_v50 = vpop.f32.mrf.mxu1  ;;  %1029 = vmatmul.mubr.f32.gmra.mxu0 %v812_v38 }
 0x1fd   :  { %v815_v46 = vmax.f32 %v756_v44, 0.0  ;;  %v760_v57 = vadd.f32 %v759_v50, %v1876_v3 }
 0x1fe   :  { %v761_v1 = vpop.f32.mrf.mxu1 }
 0x1ff   :  { %v762_v4 = vadd.f32 %v761_v1, %v1880_v9  ;;  %1033 = vmatprep.mubr.f32.mxu0 %v815_v46  ;;  %v816_v21 = vmax.f32 %v760_v57, 0.0 }
 0x200   :  { %v765_v12 = vpop.f32.mrf.mxu1  ;;  %1034 = vmatmul.mubr.f32.gmra.mxu0 %v814_v56 }
 0x201   :  { %v817_v13 = vmax.f32 %v762_v4, 0.0  ;;  %v766_v22 = vadd.f32 %v765_v12, %v1876_v3 }
 0x202   :  { %v767_v32 = vpop.f32.mrf.mxu1 }
 0x203   :  { %v768_v33 = vadd.f32 %v767_v32, %v1880_v9  ;;  %1038 = vmatprep.mubr.f32.mxu0 %v817_v13  ;;  %v818_v42 = vmax.f32 %v766_v22, 0.0 }
 0x204   :  { %1039 = vmatmul.mubr.f32.gmra.mxu0 %v816_v21 }
 0x205   :  { %v819_v41 = vmax.f32 %v768_v33, 0.0 }
 0x207   :  { %1043 = vmatprep.mubr.f32.mxu0 %v819_v41 }
 0x208   :  { %1044 = vmatmul.mubr.f32.gmra.mxu0 %v818_v42 }
 0x209   :  { %1166 = shalt.err (!%p1163_p9)
}
 0x20a   :  { %1088 = dma.vmem_to_hbm [thread:$0]  %s1083_s15, 6400, %s2076_s8, [#allocation4], %s1180_s30, %s1180_s30, %s1181_s9   ;;  %vm1049_vm1 = vcmask 15360  }
 0x20b   :  { %v1941_v3 = vld [vmem:[%s2074_s6] ss:$0 sm:$0xff] }
 0x268   :  { %v925_v9 = vpop.f32.mrf.mxu0 }
 0x269   :  { %v926_v55 = vadd.f32 %v1941_v3, %v925_v9 }
 0x26a   :  { %v927_v58 = vpop.f32.mrf.mxu0 }
 0x26b   :  { %1050 = vst.msk [vmem:[%s2075_s7] sm:$0xff] %vm1049_vm1, %v926_v55 }
 0x26c   :  { %v930_v5 = vpop.f32.mrf.mxu0 }
 0x26d   :  { %v931_v6 = vadd.f32 %v1941_v3, %v930_v5 }
 0x26e   :  { %v932_v15 = vpop.f32.mrf.mxu0 }
 0x26f   :  { %1051 = vst.msk [vmem:[%s2075_s7 + $0x8] sm:$0xff] %vm1049_vm1, %v931_v6 }
 0x270   :  { %v935_v18 = vpop.f32.mrf.mxu0 }
 0x271   :  { %v936_v27 = vadd.f32 %v1941_v3, %v935_v18 }
 0x272   :  { %v937_v28 = vpop.f32.mrf.mxu0 }
 0x273   :  { %1052 = vst.msk [vmem:[%s2075_s7 + $0x10] sm:$0xff] %vm1049_vm1, %v936_v27 }
 0x274   :  { %v940_v36 = vpop.f32.mrf.mxu0 }
 0x275   :  { %v941_v26 = vadd.f32 %v1941_v3, %v940_v36 }
 0x276   :  { %v942_v29 = vpop.f32.mrf.mxu0 }
 0x277   :  { %1053 = vst.msk [vmem:[%s2075_s7 + $0x18] sm:$0xff] %vm1049_vm1, %v941_v26 }
 0x278   :  { %v945_v34 = vpop.f32.mrf.mxu0 }
 0x279   :  { %v946_v35 = vadd.f32 %v1941_v3, %v945_v34 }
 0x27a   :  { %v947_v39 = vpop.f32.mrf.mxu0 }
 0x27b   :  { %1054 = vst.msk [vmem:[%s2075_s7 + $0x20] sm:$0xff] %vm1049_vm1, %v946_v35 }
 0x27c   :  { %v950_v40 = vpop.f32.mrf.mxu0 }
 0x27d   :  { %v951_v43 = vadd.f32 %v1941_v3, %v950_v40 }
 0x27e   :  { %v952_v48 = vpop.f32.mrf.mxu0 }
 0x27f   :  { %1055 = vst.msk [vmem:[%s2075_s7 + $0x28] sm:$0xff] %vm1049_vm1, %v951_v43 }
 0x280   :  { %v955_v49 = vpop.f32.mrf.mxu0 }
 0x281   :  { %v956_v51 = vadd.f32 %v1941_v3, %v955_v49 }
 0x282   :  { %v957_v53 = vpop.f32.mrf.mxu0 }
 0x283   :  { %1056 = vst.msk [vmem:[%s2075_s7 + $0x30] sm:$0xff] %vm1049_vm1, %v956_v51 }
 0x284   :  { %v960_v60 = vpop.f32.mrf.mxu0 }
 0x285   :  { %v961_v61 = vadd.f32 %v1941_v3, %v960_v60 }
 0x286   :  { %v962_v62 = vpop.f32.mrf.mxu0 }
 0x287   :  { %1057 = vst.msk [vmem:[%s2075_s7 + $0x38] sm:$0xff] %vm1049_vm1, %v961_v61 }
 0x288   :  { %v965_v63 = vpop.f32.mrf.mxu0 }
 0x289   :  { %v966_v7 = vadd.f32 %v1941_v3, %v965_v63 }
 0x28a   :  { %v967_v8 = vpop.f32.mrf.mxu0 }
 0x28b   :  { %1058 = vst.msk [vmem:[%s2075_s7 + $0x40] sm:$0xff] %vm1049_vm1, %v966_v7 }
 0x28c   :  { %v970_v11 = vpop.f32.mrf.mxu0 }
 0x28d   :  { %v971_v14 = vadd.f32 %v1941_v3, %v970_v11 }
 0x28e   :  { %v972_v19 = vpop.f32.mrf.mxu0 }
 0x28f   :  { %1059 = vst.msk [vmem:[%s2075_s7 + $0x48] sm:$0xff] %vm1049_vm1, %v971_v14 }
 0x290   :  { %v975_v20 = vpop.f32.mrf.mxu0 }
 0x291   :  { %v976_v25 = vadd.f32 %v1941_v3, %v975_v20 }
 0x292   :  { %v977_v52 = vpop.f32.mrf.mxu0 }
 0x293   :  { %1060 = vst.msk [vmem:[%s2075_s7 + $0x50] sm:$0xff] %vm1049_vm1, %v976_v25 }
 0x294   :  { %v980_v54 = vpop.f32.mrf.mxu0 }
 0x295   :  { %v981_v59 = vadd.f32 %v1941_v3, %v980_v54 }
 0x296   :  { %v982_v2 = vpop.f32.mrf.mxu0 }
 0x297   :  { %1061 = vst.msk [vmem:[%s2075_s7 + $0x58] sm:$0xff] %vm1049_vm1, %v981_v59 }
 0x298   :  { %v985_v0 = vpop.f32.mrf.mxu0 }
 0x299   :  { %v986_v10 = vadd.f32 %v1941_v3, %v985_v0 }
 0x29a   :  { %v987_v16 = vpop.f32.mrf.mxu0 }
 0x29b   :  { %1062 = vst.msk [vmem:[%s2075_s7 + $0x60] sm:$0xff] %vm1049_vm1, %v986_v10 }
 0x29c   :  { %v990_v17 = vpop.f32.mrf.mxu0 }
 0x29d   :  { %v991_v23 = vadd.f32 %v1941_v3, %v990_v17 }
 0x29e   :  { %v992_v24 = vpop.f32.mrf.mxu0 }
 0x29f   :  { %1063 = vst.msk [vmem:[%s2075_s7 + $0x68] sm:$0xff] %vm1049_vm1, %v991_v23 }
 0x2a0   :  { %v995_v30 = vpop.f32.mrf.mxu0 }
 0x2a1   :  { %v996_v31 = vadd.f32 %v1941_v3, %v995_v30 }
 0x2a2   :  { %v997_v37 = vpop.f32.mrf.mxu0 }
 0x2a3   :  { %1064 = vst.msk [vmem:[%s2075_s7 + $0x70] sm:$0xff] %vm1049_vm1, %v996_v31 }
 0x2a4   :  { %v1000_v38 = vpop.f32.mrf.mxu0 }
 0x2a5   :  { %v1001_v45 = vadd.f32 %v1941_v3, %v1000_v38 }
 0x2a6   :  { %v1002_v47 = vpop.f32.mrf.mxu0 }
 0x2a7   :  { %1065 = vst.msk [vmem:[%s2075_s7 + $0x78] sm:$0xff] %vm1049_vm1, %v1001_v45 }
 0x2a8   :  { %v1005_v44 = vpop.f32.mrf.mxu0 }
 0x2a9   :  { %v1006_v50 = vadd.f32 %v1941_v3, %v1005_v44 }
 0x2aa   :  { %v1007_v46 = vpop.f32.mrf.mxu0 }
 0x2ab   :  { %1066 = vst.msk [vmem:[%s2075_s7 + $0x80] sm:$0xff] %vm1049_vm1, %v1006_v50 }
 0x2ac   :  { %v1010_v56 = vpop.f32.mrf.mxu0 }
 0x2ad   :  { %v1011_v57 = vadd.f32 %v1941_v3, %v1010_v56 }
 0x2ae   :  { %v1012_v1 = vpop.f32.mrf.mxu0 }
 0x2af   :  { %1067 = vst.msk [vmem:[%s2075_s7 + $0x88] sm:$0xff] %vm1049_vm1, %v1011_v57 }
 0x2b0   :  { %v1015_v4 = vpop.f32.mrf.mxu0 }
 0x2b1   :  { %v1016_v12 = vadd.f32 %v1941_v3, %v1015_v4 }
 0x2b2   :  { %v1017_v13 = vpop.f32.mrf.mxu0 }
 0x2b3   :  { %1068 = vst.msk [vmem:[%s2075_s7 + $0x90] sm:$0xff] %vm1049_vm1, %v1016_v12 }
 0x2b4   :  { %v1020_v21 = vpop.f32.mrf.mxu0 }
 0x2b5   :  { %v1021_v22 = vadd.f32 %v1941_v3, %v1020_v21 }
 0x2b6   :  { %v1022_v32 = vpop.f32.mrf.mxu0 }
 0x2b7   :  { %1069 = vst.msk [vmem:[%s2075_s7 + $0x98] sm:$0xff] %vm1049_vm1, %v1021_v22 }
 0x2b8   :  { %v1025_v33 = vpop.f32.mrf.mxu0 }
 0x2b9   :  { %v1026_v41 = vadd.f32 %v1941_v3, %v1025_v33 }
 0x2ba   :  { %v1027_v42 = vpop.f32.mrf.mxu0 }
 0x2bb   :  { %1070 = vst.msk [vmem:[%s2075_s7 + $0xa0] sm:$0xff] %vm1049_vm1, %v1026_v41 }
 0x2bc   :  { %v1030_v9 = vpop.f32.mrf.mxu0 }
 0x2bd   :  { %v1031_v55 = vadd.f32 %v1941_v3, %v1030_v9 }
 0x2be   :  { %v1032_v58 = vpop.f32.mrf.mxu0 }
 0x2bf   :  { %1071 = vst.msk [vmem:[%s2075_s7 + $0xa8] sm:$0xff] %vm1049_vm1, %v1031_v55 }
 0x2c0   :  { %v1035_v5 = vpop.f32.mrf.mxu0 }
 0x2c1   :  { %v1036_v6 = vadd.f32 %v1941_v3, %v1035_v5 }
 0x2c2   :  { %v1037_v15 = vpop.f32.mrf.mxu0 }
 0x2c3   :  { %1072 = vst.msk [vmem:[%s2075_s7 + $0xb0] sm:$0xff] %vm1049_vm1, %v1036_v6 }
 0x2c4   :  { %v1040_v18 = vpop.f32.mrf.mxu0 }
 0x2c5   :  { %v1041_v27 = vadd.f32 %v1941_v3, %v1040_v18 }
 0x2c6   :  { %v1042_v28 = vpop.f32.mrf.mxu0 }
 0x2c7   :  { %1073 = vst.msk [vmem:[%s2075_s7 + $0xb8] sm:$0xff] %vm1049_vm1, %v1041_v27 }
 0x2c8   :  { %v1045_v36 = vpop.f32.mrf.mxu0 }
 0x2c9   :  { %v1046_v26 = vadd.f32 %v1941_v3, %v1045_v36 }
 0x2ca   :  { %v1047_v29 = vpop.f32.mrf.mxu0 }
 0x2cb   :  { %1074 = vst.msk [vmem:[%s2075_s7 + $0xc0] sm:$0xff] %vm1049_vm1, %v1046_v26 }
 0x2cc   :  { %1177 = dma.done.wait [#allocation4], 6400  }
 0x2cd   :  { %1178 = vsyncadd [#allocation4], 4294960896 }
 0x2ce   :  { %1094 = vsyncpa [#allocation3], 1 }
 0x2cf   :  { %1095 = vsyncpa [#allocation4], 1 }

</bundles_post_ra>
